<compile_context>
chip_gen: v6e
topology: v6e:2x2x1
jax: 0.10.0
libtpu: 0.0.40
codegen_flags: <defaults>
</compile_context>

<pallas_src>
import functools

import numpy as np
import jax
import jax.numpy as jnp
from jax import lax
from jax.experimental import pallas as pl
from jax.experimental.pallas import tpu as pltpu


def _gelu(x):
    c = 0.7978845608028654  # sqrt(2/pi)
    return 0.5 * x * (1.0 + jnp.tanh(c * (x + 0.044715 * (x * x * x))))


def _layernorm_c(x, g, b, eps=1e-5):
    # LayerNorm over the channel axis (axis 0 in the (C, L) layout).
    mu = jnp.mean(x, axis=0, keepdims=True)
    xc = x - mu
    var = jnp.mean(xc * xc, axis=0, keepdims=True)
    return xc * lax.rsqrt(var + eps) * g + b


# ----------------------------------------------------------------------------
# Fused kernel (one batch element per grid step, data laid out as (C, L)):
#   depthwise Conv1d(k=3,pad=1) + folded eval-BN + GELU + GELU
#   -> selective scan (two (C,C)@(C,L) MXU matmuls, shared (C,C) matrix)
#   -> 3x3 avg_pool residual (forward) / 2x (backward; factor folded into bw)
#   -> Linear+LayerNorm+GELU projections -> sigmoid SSM gate -> LayerNorm
#   -> out Linear (0.1 residual scale folded in) -> identity + out
# ----------------------------------------------------------------------------
def _msmamba_kernel(w_spatial, x_ref, mask_ref, pvec_ref,
                    mt_ref, fw_ref, bw_ref, ow_ref, o_ref):
    x = x_ref[...]                                   # (C, L)
    L = x.shape[1]

    col = lambda k: pvec_ref[:, k:k + 1]             # (C, 1) per-channel vector
    row = lambda k: mask_ref[k:k + 1, :]             # (1, L) boundary mask

    # zero-padded neighbours along the flattened sequence (XLU lane rolls; the
    # wrap-around contributions are killed by the boundary masks).
    x_prev = row(4) * pltpu.roll(x, shift=1, axis=1)         # x[l-1]
    x_next = row(5) * pltpu.roll(x, shift=L - 1, axis=1)     # x[l+1]

    # depthwise conv (BN scale folded into the taps) + BN shift, then the GELU
    # inside the Sequential plus the extra F.gelu in forward().
    yf = _gelu(_gelu(col(0) * x_prev + col(1) * x + col(2) * x_next + col(6)))
    yb = _gelu(_gelu(col(3) * x_prev + col(4) * x + col(5) * x_next + col(7)))

    # selective scan:
    #   einsum('bcd,ce->bed', y, B@C.T)  ==  (B@C.T).T @ y   (per batch)
    #   ('backward' flips L before/after the einsum -> flips cancel exactly)
    mt = mt_ref[...]
    scan_f = jnp.dot(mt, yf, preferred_element_type=jnp.float32)   # (C, L)
    scan_b = jnp.dot(mt, yb, preferred_element_type=jnp.float32)   # (C, L)

    # F.avg_pool2d(x, 3, stride=1, padding=1) (count_include_pad=True) residual,
    # computed separably on the flattened h*W + w index with boundary masks.
    sum_w = (scan_f
             + row(0) * pltpu.roll(scan_f, shift=1, axis=1)
             + row(1) * pltpu.roll(scan_f, shift=L - 1, axis=1))
    sum_hw = (sum_w
              + row(2) * pltpu.roll(sum_w, shift=w_spatial, axis=1)
              + row(3) * pltpu.roll(sum_w, shift=L - w_spatial, axis=1))
    xf = scan_f + sum_hw * (1.0 / 9.0)

    # forward_proj : Linear -> LayerNorm -> GELU
    hf = jnp.dot(fw_ref[...], xf, preferred_element_type=jnp.float32) + col(8)
    hf = _gelu(_layernorm_c(hf, col(9), col(10)))

    # backward branch: adaptive_avg_pool2d to the same size is the identity, so
    # x + pool == 2x; the factor 2 is folded into bw_ref in the wrapper.
    hb = jnp.dot(bw_ref[...], scan_b, preferred_element_type=jnp.float32) + col(11)
    hb = _gelu(_layernorm_c(hb, col(12), col(13)))

    # sigmoid SSM gate (precomputed in the wrapper) -> LayerNorm -> out_proj
    s = _layernorm_c((hf + hb) * col(14), col(15), col(16))

    # out_proj with the 0.1 residual scale folded into weight and bias.
    o_ref[...] = (x
                  + jnp.dot(ow_ref[...], s, preferred_element_type=jnp.float32)
                  + col(17))


# ----------------------------------------------------------------------------
# Wrapper
# ----------------------------------------------------------------------------
def msmamba_forward(x_nchw, params):
    Bn, C, H, W = x_nchw.shape
    L = H * W
    # x.view(B, C, H*W): free reshape, no transpose.
    x_bcl = x_nchw.reshape(Bn, C, L).astype(jnp.float32)

    # ---- parameter glue (plain JAX, tiny, runs once) ----
    eps_bn = 1e-5

    def fold_bn(w, gamma, beta, mean, var):
        scale = gamma / jnp.sqrt(var + eps_bn)
        return w * scale[:, None], beta - mean * scale

    wf_fold, bnf_shift = fold_bn(params["wf"], params["bnf_g"], params["bnf_b"],
                                 params["bnf_rm"], params["bnf_rv"])
    wb_fold, bnb_shift = fold_bn(params["wb"], params["bnb_g"], params["bnb_b"],
                                 params["bnb_rm"], params["bnb_rv"])

    M = params["Bp"] @ params["Cp"].T                       # (C, C)
    MT = M.T
    # input-independent sigmoid gate, computed once outside the kernel
    ssm_w = jax.nn.sigmoid(params["D"] + params["A"].sum(axis=1) + M.sum(axis=1))

    # boundary-validity masks for the flattened conv / 3x3 pooling (static glue)
    li = np.arange(L)
    h_idx, w_idx = li // W, li % W
    masks = np.zeros((8, L), np.float32)
    masks[0] = (w_idx > 0)            # left neighbour valid      (pool)
    masks[1] = (w_idx < W - 1)        # right neighbour valid     (pool)
    masks[2] = (h_idx > 0)            # upper neighbour valid     (pool)
    masks[3] = (h_idx < H - 1)        # lower neighbour valid     (pool)
    masks[4] = (li > 0)               # x[l-1] valid              (conv)
    masks[5] = (li < L - 1)           # x[l+1] valid              (conv)
    masks = jnp.asarray(masks)

    colv = lambda v: v.reshape(C, 1).astype(jnp.float32)
    pvec = jnp.concatenate([
        wf_fold, wb_fold,                                    # cols 0-2, 3-5
        colv(bnf_shift), colv(bnb_shift),                    # 6, 7
        colv(params["fproj_b"]), colv(params["fln_g"]), colv(params["fln_b"]),   # 8-10
        colv(params["bproj_b"]), colv(params["bln_g"]), colv(params["bln_b"]),   # 11-13
        colv(ssm_w), colv(params["norm_g"]), colv(params["norm_b"]),             # 14-16
        colv(0.1 * params["out_b"]),                         # 17 (0.1 folded in)
    ], axis=1).astype(jnp.float32)                           # (C, 18)

    batch_spec = pl.BlockSpec((None, C, L), lambda b: (b, 0, 0))
    full = lambda shape: pl.BlockSpec(shape, lambda b: (0,) * len(shape))

    out_bcl = pl.pallas_call(
        functools.partial(_msmamba_kernel, W),
        grid=(Bn,),
        in_specs=[batch_spec,
                  full((8, L)), full((C, 18)),
                  full((C, C)), full((C, C)), full((C, C)), full((C, C))],
        out_specs=batch_spec,
        out_shape=jax.ShapeDtypeStruct((Bn, C, L), jnp.float32),
        compiler_params=pltpu.CompilerParams(
            dimension_semantics=("parallel",),
            vmem_limit_bytes=64 * 1024 * 1024),
    )(x_bcl, masks, pvec,
      MT.astype(jnp.float32),
      params["fproj_w"].astype(jnp.float32),
      (2.0 * params["bproj_w"]).astype(jnp.float32),   # "x + adaptive pool" = 2x folded in
      (0.1 * params["out_w"]).astype(jnp.float32))     # residual 0.1 folded in

    return out_bcl.reshape(Bn, C, H, W)


def init_params(key, dim, d_state):
    ks = jax.random.split(key, 11)
    n = lambda k, shape, s: (s * jax.random.normal(k, shape)).astype(jnp.float32)
    ones = jnp.ones((dim,), jnp.float32)
    zeros = jnp.zeros((dim,), jnp.float32)
    return dict(
        A=n(ks[0], (dim, d_state), 1.0),
        Bp=n(ks[1], (dim, d_state), 1.0),
        Cp=n(ks[2], (dim, d_state), 1.0),
        D=zeros,
        # depthwise Conv1d weight (dim, 1, 3) stored as (C, 3)
        wf=n(ks[3], (dim, 3), 0.5),
        wb=n(ks[4], (dim, 3), 0.5),
        # eval-mode BatchNorm1d with default init / running stats
        bnf_g=ones, bnf_b=zeros, bnf_rm=zeros, bnf_rv=ones,
        bnb_g=ones, bnb_b=zeros, bnb_rm=zeros, bnb_rv=ones,
        # Linear weights in PyTorch (out, in) orientation
        fproj_w=n(ks[5], (dim, dim), 0.1), fproj_b=n(ks[6], (dim,), 0.1),
        fln_g=ones, fln_b=zeros,
        bproj_w=n(ks[7], (dim, dim), 0.1), bproj_b=n(ks[8], (dim,), 0.1),
        bln_g=ones, bln_b=zeros,
        norm_g=ones, norm_b=zeros,
        out_w=n(ks[9], (dim, dim), 0.1), out_b=n(ks[10], (dim,), 0.1),
    )


if __name__ == "__main__":
    dim, d_state = 32, 8
    Bn, H, W = 2, 16, 16          # L = 256: lane-dense output stores
    key = jax.random.PRNGKey(0)
    kx, kp = jax.random.split(key)
    x = jax.random.normal(kx, (Bn, dim, H, W), dtype=jnp.float32)
    params = init_params(kp, dim, d_state)

    out = jax.block_until_ready(msmamba_forward(x, params))

    assert out.shape == (Bn, dim, H, W), out.shape
    assert bool(jnp.all(jnp.isfinite(out)))
    print("KERNEL_OK")
</pallas_src>

<mosaic_0001>
module attributes {stable_mosaic.version = 11 : i64} {
  func.func @_msmamba_kernel(%arg0: i32, %arg1: memref<1x32x256xf32, #tpu.memory_space<vmem>>, %arg2: memref<8x256xf32, #tpu.memory_space<vmem>>, %arg3: memref<32x18xf32, #tpu.memory_space<vmem>>, %arg4: memref<32x32xf32, #tpu.memory_space<vmem>>, %arg5: memref<32x32xf32, #tpu.memory_space<vmem>>, %arg6: memref<32x32xf32, #tpu.memory_space<vmem>>, %arg7: memref<32x32xf32, #tpu.memory_space<vmem>>, %arg8: memref<1x32x256xf32, #tpu.memory_space<vmem>>) attributes {dimension_semantics = [#tpu.dimension_semantics<parallel>], iteration_bounds = array<i64: 2>, scalar_prefetch = 0 : i64, scratch_operands = 0 : i64, tpu.core_type = #tpu.core_type<tc>, window_params = [{transform_indices = @transform_0, window_bounds = array<i64: 1, 32, 256>}, {pipeline_mode = #tpu.pipeline_mode<synchronous>, transform_indices = @transform_1, window_bounds = array<i64: 8, 256>}, {pipeline_mode = #tpu.pipeline_mode<synchronous>, transform_indices = @transform_2, window_bounds = array<i64: 32, 18>}, {pipeline_mode = #tpu.pipeline_mode<synchronous>, transform_indices = @transform_3, window_bounds = array<i64: 32, 32>}, {pipeline_mode = #tpu.pipeline_mode<synchronous>, transform_indices = @transform_4, window_bounds = array<i64: 32, 32>}, {pipeline_mode = #tpu.pipeline_mode<synchronous>, transform_indices = @transform_5, window_bounds = array<i64: 32, 32>}, {pipeline_mode = #tpu.pipeline_mode<synchronous>, transform_indices = @transform_6, window_bounds = array<i64: 32, 32>}, {transform_indices = @transform_7, window_bounds = array<i64: 1, 32, 256>}]} {
    %c0 = arith.constant 0 : index
    %c0_0 = arith.constant 0 : index
    %c0_1 = arith.constant 0 : index
    %0 = vector.load %arg1[%c0, %c0_0, %c0_1] : memref<1x32x256xf32, #tpu.memory_space<vmem>>, vector<1x32x256xf32>
    %1 = vector.shape_cast %0 : vector<1x32x256xf32> to vector<32x256xf32>
    %c4 = arith.constant 4 : index
    %c0_2 = arith.constant 0 : index
    %2 = vector.load %arg2[%c4, %c0_2] : memref<8x256xf32, #tpu.memory_space<vmem>>, vector<1x256xf32>
    %c1_i32 = arith.constant 1 : i32
    %3 = tpu.dynamic_rotate %1 by %c1_i32 dim 1 : vector<32x256xf32>, i32 -> vector<32x256xf32>
    %4 = vector.broadcast %2 : vector<1x256xf32> to vector<32x256xf32>
    %5 = arith.mulf %4, %3 : vector<32x256xf32>
    %c5 = arith.constant 5 : index
    %c0_3 = arith.constant 0 : index
    %6 = vector.load %arg2[%c5, %c0_3] : memref<8x256xf32, #tpu.memory_space<vmem>>, vector<1x256xf32>
    %c255_i32 = arith.constant 255 : i32
    %7 = tpu.dynamic_rotate %1 by %c255_i32 dim 1 : vector<32x256xf32>, i32 -> vector<32x256xf32>
    %8 = vector.broadcast %6 : vector<1x256xf32> to vector<32x256xf32>
    %9 = arith.mulf %8, %7 : vector<32x256xf32>
    %c0_4 = arith.constant 0 : index
    %c0_5 = arith.constant 0 : index
    %10 = vector.load %arg3[%c0_4, %c0_5] : memref<32x18xf32, #tpu.memory_space<vmem>>, vector<32x1xf32>
    %11 = vector.broadcast %10 : vector<32x1xf32> to vector<32x256xf32>
    %12 = arith.mulf %11, %5 : vector<32x256xf32>
    %c0_6 = arith.constant 0 : index
    %c1 = arith.constant 1 : index
    %13 = vector.load %arg3[%c0_6, %c1] : memref<32x18xf32, #tpu.memory_space<vmem>>, vector<32x1xf32>
    %14 = vector.broadcast %13 : vector<32x1xf32> to vector<32x256xf32>
    %15 = arith.mulf %14, %1 : vector<32x256xf32>
    %16 = arith.addf %12, %15 : vector<32x256xf32>
    %c0_7 = arith.constant 0 : index
    %c2 = arith.constant 2 : index
    %17 = vector.load %arg3[%c0_7, %c2] : memref<32x18xf32, #tpu.memory_space<vmem>>, vector<32x1xf32>
    %18 = vector.broadcast %17 : vector<32x1xf32> to vector<32x256xf32>
    %19 = arith.mulf %18, %9 : vector<32x256xf32>
    %20 = arith.addf %16, %19 : vector<32x256xf32>
    %c0_8 = arith.constant 0 : index
    %c6 = arith.constant 6 : index
    %21 = vector.load %arg3[%c0_8, %c6] : memref<32x18xf32, #tpu.memory_space<vmem>>, vector<32x1xf32>
    %22 = vector.broadcast %21 : vector<32x1xf32> to vector<32x256xf32>
    %23 = arith.addf %20, %22 : vector<32x256xf32>
    %cst = arith.constant 5.000000e-01 : f32
    %24 = vector.broadcast %cst : f32 to vector<32x256xf32>
    %25 = arith.mulf %24, %23 : vector<32x256xf32>
    %26 = arith.mulf %23, %23 : vector<32x256xf32>
    %27 = arith.mulf %26, %23 : vector<32x256xf32>
    %cst_9 = arith.constant 4.471500e-02 : f32
    %28 = vector.broadcast %cst_9 : f32 to vector<32x256xf32>
    %29 = arith.mulf %28, %27 : vector<32x256xf32>
    %30 = arith.addf %23, %29 : vector<32x256xf32>
    %cst_10 = arith.constant 0.797884583 : f32
    %31 = vector.broadcast %cst_10 : f32 to vector<32x256xf32>
    %32 = arith.mulf %31, %30 : vector<32x256xf32>
    %33 = math.tanh %32 : vector<32x256xf32>
    %cst_11 = arith.constant 1.000000e+00 : f32
    %34 = vector.broadcast %cst_11 : f32 to vector<32x256xf32>
    %35 = arith.addf %34, %33 : vector<32x256xf32>
    %36 = arith.mulf %25, %35 : vector<32x256xf32>
    %cst_12 = arith.constant 5.000000e-01 : f32
    %37 = vector.broadcast %cst_12 : f32 to vector<32x256xf32>
    %38 = arith.mulf %37, %36 : vector<32x256xf32>
    %39 = arith.mulf %36, %36 : vector<32x256xf32>
    %40 = arith.mulf %39, %36 : vector<32x256xf32>
    %cst_13 = arith.constant 4.471500e-02 : f32
    %41 = vector.broadcast %cst_13 : f32 to vector<32x256xf32>
    %42 = arith.mulf %41, %40 : vector<32x256xf32>
    %43 = arith.addf %36, %42 : vector<32x256xf32>
    %cst_14 = arith.constant 0.797884583 : f32
    %44 = vector.broadcast %cst_14 : f32 to vector<32x256xf32>
    %45 = arith.mulf %44, %43 : vector<32x256xf32>
    %46 = math.tanh %45 : vector<32x256xf32>
    %cst_15 = arith.constant 1.000000e+00 : f32
    %47 = vector.broadcast %cst_15 : f32 to vector<32x256xf32>
    %48 = arith.addf %47, %46 : vector<32x256xf32>
    %49 = arith.mulf %38, %48 : vector<32x256xf32>
    %c0_16 = arith.constant 0 : index
    %c3 = arith.constant 3 : index
    %50 = vector.load %arg3[%c0_16, %c3] : memref<32x18xf32, #tpu.memory_space<vmem>>, vector<32x1xf32>
    %51 = vector.broadcast %50 : vector<32x1xf32> to vector<32x256xf32>
    %52 = arith.mulf %51, %5 : vector<32x256xf32>
    %c0_17 = arith.constant 0 : index
    %c4_18 = arith.constant 4 : index
    %53 = vector.load %arg3[%c0_17, %c4_18] : memref<32x18xf32, #tpu.memory_space<vmem>>, vector<32x1xf32>
    %54 = vector.broadcast %53 : vector<32x1xf32> to vector<32x256xf32>
    %55 = arith.mulf %54, %1 : vector<32x256xf32>
    %56 = arith.addf %52, %55 : vector<32x256xf32>
    %c0_19 = arith.constant 0 : index
    %c5_20 = arith.constant 5 : index
    %57 = vector.load %arg3[%c0_19, %c5_20] : memref<32x18xf32, #tpu.memory_space<vmem>>, vector<32x1xf32>
    %58 = vector.broadcast %57 : vector<32x1xf32> to vector<32x256xf32>
    %59 = arith.mulf %58, %9 : vector<32x256xf32>
    %60 = arith.addf %56, %59 : vector<32x256xf32>
    %c0_21 = arith.constant 0 : index
    %c7 = arith.constant 7 : index
    %61 = vector.load %arg3[%c0_21, %c7] : memref<32x18xf32, #tpu.memory_space<vmem>>, vector<32x1xf32>
    %62 = vector.broadcast %61 : vector<32x1xf32> to vector<32x256xf32>
    %63 = arith.addf %60, %62 : vector<32x256xf32>
    %cst_22 = arith.constant 5.000000e-01 : f32
    %64 = vector.broadcast %cst_22 : f32 to vector<32x256xf32>
    %65 = arith.mulf %64, %63 : vector<32x256xf32>
    %66 = arith.mulf %63, %63 : vector<32x256xf32>
    %67 = arith.mulf %66, %63 : vector<32x256xf32>
    %cst_23 = arith.constant 4.471500e-02 : f32
    %68 = vector.broadcast %cst_23 : f32 to vector<32x256xf32>
    %69 = arith.mulf %68, %67 : vector<32x256xf32>
    %70 = arith.addf %63, %69 : vector<32x256xf32>
    %cst_24 = arith.constant 0.797884583 : f32
    %71 = vector.broadcast %cst_24 : f32 to vector<32x256xf32>
    %72 = arith.mulf %71, %70 : vector<32x256xf32>
    %73 = math.tanh %72 : vector<32x256xf32>
    %cst_25 = arith.constant 1.000000e+00 : f32
    %74 = vector.broadcast %cst_25 : f32 to vector<32x256xf32>
    %75 = arith.addf %74, %73 : vector<32x256xf32>
    %76 = arith.mulf %65, %75 : vector<32x256xf32>
    %cst_26 = arith.constant 5.000000e-01 : f32
    %77 = vector.broadcast %cst_26 : f32 to vector<32x256xf32>
    %78 = arith.mulf %77, %76 : vector<32x256xf32>
    %79 = arith.mulf %76, %76 : vector<32x256xf32>
    %80 = arith.mulf %79, %76 : vector<32x256xf32>
    %cst_27 = arith.constant 4.471500e-02 : f32
    %81 = vector.broadcast %cst_27 : f32 to vector<32x256xf32>
    %82 = arith.mulf %81, %80 : vector<32x256xf32>
    %83 = arith.addf %76, %82 : vector<32x256xf32>
    %cst_28 = arith.constant 0.797884583 : f32
    %84 = vector.broadcast %cst_28 : f32 to vector<32x256xf32>
    %85 = arith.mulf %84, %83 : vector<32x256xf32>
    %86 = math.tanh %85 : vector<32x256xf32>
    %cst_29 = arith.constant 1.000000e+00 : f32
    %87 = vector.broadcast %cst_29 : f32 to vector<32x256xf32>
    %88 = arith.addf %87, %86 : vector<32x256xf32>
    %89 = arith.mulf %78, %88 : vector<32x256xf32>
    %c0_30 = arith.constant 0 : index
    %c0_31 = arith.constant 0 : index
    %90 = vector.load %arg4[%c0_30, %c0_31] : memref<32x32xf32, #tpu.memory_space<vmem>>, vector<32x32xf32>
    %cst_32 = arith.constant dense<0.000000e+00> : vector<32x256xf32>
    %91 = tpu.matmul %90, %49, %cst_32 {dimension_numbers = #tpu.dot_dimension_numbers<[1], [0], [0], [1], [0, 0, 1, 1], [], []>} : vector<32x32xf32>, vector<32x256xf32>, vector<32x256xf32> -> vector<32x256xf32>
    %cst_33 = arith.constant dense<0.000000e+00> : vector<32x256xf32>
    %92 = tpu.matmul %90, %89, %cst_33 {dimension_numbers = #tpu.dot_dimension_numbers<[1], [0], [0], [1], [0, 0, 1, 1], [], []>} : vector<32x32xf32>, vector<32x256xf32>, vector<32x256xf32> -> vector<32x256xf32>
    %c0_34 = arith.constant 0 : index
    %c0_35 = arith.constant 0 : index
    %93 = vector.load %arg2[%c0_34, %c0_35] : memref<8x256xf32, #tpu.memory_space<vmem>>, vector<1x256xf32>
    %c1_i32_36 = arith.constant 1 : i32
    %94 = tpu.dynamic_rotate %91 by %c1_i32_36 dim 1 : vector<32x256xf32>, i32 -> vector<32x256xf32>
    %95 = vector.broadcast %93 : vector<1x256xf32> to vector<32x256xf32>
    %96 = arith.mulf %95, %94 : vector<32x256xf32>
    %97 = arith.addf %91, %96 : vector<32x256xf32>
    %c1_37 = arith.constant 1 : index
    %c0_38 = arith.constant 0 : index
    %98 = vector.load %arg2[%c1_37, %c0_38] : memref<8x256xf32, #tpu.memory_space<vmem>>, vector<1x256xf32>
    %c255_i32_39 = arith.constant 255 : i32
    %99 = tpu.dynamic_rotate %91 by %c255_i32_39 dim 1 : vector<32x256xf32>, i32 -> vector<32x256xf32>
    %100 = vector.broadcast %98 : vector<1x256xf32> to vector<32x256xf32>
    %101 = arith.mulf %100, %99 : vector<32x256xf32>
    %102 = arith.addf %97, %101 : vector<32x256xf32>
    %c2_40 = arith.constant 2 : index
    %c0_41 = arith.constant 0 : index
    %103 = vector.load %arg2[%c2_40, %c0_41] : memref<8x256xf32, #tpu.memory_space<vmem>>, vector<1x256xf32>
    %c16_i32 = arith.constant 16 : i32
    %104 = tpu.dynamic_rotate %102 by %c16_i32 dim 1 : vector<32x256xf32>, i32 -> vector<32x256xf32>
    %105 = vector.broadcast %103 : vector<1x256xf32> to vector<32x256xf32>
    %106 = arith.mulf %105, %104 : vector<32x256xf32>
    %107 = arith.addf %102, %106 : vector<32x256xf32>
    %c3_42 = arith.constant 3 : index
    %c0_43 = arith.constant 0 : index
    %108 = vector.load %arg2[%c3_42, %c0_43] : memref<8x256xf32, #tpu.memory_space<vmem>>, vector<1x256xf32>
    %c240_i32 = arith.constant 240 : i32
    %109 = tpu.dynamic_rotate %102 by %c240_i32 dim 1 : vector<32x256xf32>, i32 -> vector<32x256xf32>
    %110 = vector.broadcast %108 : vector<1x256xf32> to vector<32x256xf32>
    %111 = arith.mulf %110, %109 : vector<32x256xf32>
    %112 = arith.addf %107, %111 : vector<32x256xf32>
    %cst_44 = arith.constant 0.111111112 : f32
    %113 = vector.broadcast %cst_44 : f32 to vector<32x256xf32>
    %114 = arith.mulf %112, %113 : vector<32x256xf32>
    %115 = arith.addf %91, %114 : vector<32x256xf32>
    %c0_45 = arith.constant 0 : index
    %c0_46 = arith.constant 0 : index
    %116 = vector.load %arg5[%c0_45, %c0_46] : memref<32x32xf32, #tpu.memory_space<vmem>>, vector<32x32xf32>
    %cst_47 = arith.constant dense<0.000000e+00> : vector<32x256xf32>
    %117 = tpu.matmul %116, %115, %cst_47 {dimension_numbers = #tpu.dot_dimension_numbers<[1], [0], [0], [1], [0, 0, 1, 1], [], []>} : vector<32x32xf32>, vector<32x256xf32>, vector<32x256xf32> -> vector<32x256xf32>
    %c0_48 = arith.constant 0 : index
    %c8 = arith.constant 8 : index
    %118 = vector.load %arg3[%c0_48, %c8] : memref<32x18xf32, #tpu.memory_space<vmem>>, vector<32x1xf32>
    %119 = vector.broadcast %118 : vector<32x1xf32> to vector<32x256xf32>
    %120 = arith.addf %117, %119 : vector<32x256xf32>
    %c0_49 = arith.constant 0 : index
    %c9 = arith.constant 9 : index
    %121 = vector.load %arg3[%c0_49, %c9] : memref<32x18xf32, #tpu.memory_space<vmem>>, vector<32x1xf32>
    %c0_50 = arith.constant 0 : index
    %c10 = arith.constant 10 : index
    %122 = vector.load %arg3[%c0_50, %c10] : memref<32x18xf32, #tpu.memory_space<vmem>>, vector<32x1xf32>
    %cst_51 = arith.constant dense<0.000000e+00> : vector<256xf32>
    %123 = vector.multi_reduction <add>, %120, %cst_51 [0] : vector<32x256xf32> to vector<256xf32>
    %124 = vector.shape_cast %123 : vector<256xf32> to vector<1x256xf32>
    %cst_52 = arith.constant 3.200000e+01 : f32
    %125 = vector.broadcast %cst_52 : f32 to vector<1x256xf32>
    %126 = arith.divf %124, %125 : vector<1x256xf32>
    %127 = vector.broadcast %126 : vector<1x256xf32> to vector<32x256xf32>
    %128 = arith.subf %120, %127 : vector<32x256xf32>
    %129 = arith.mulf %128, %128 : vector<32x256xf32>
    %cst_53 = arith.constant dense<0.000000e+00> : vector<256xf32>
    %130 = vector.multi_reduction <add>, %129, %cst_53 [0] : vector<32x256xf32> to vector<256xf32>
    %131 = vector.shape_cast %130 : vector<256xf32> to vector<1x256xf32>
    %cst_54 = arith.constant 3.200000e+01 : f32
    %132 = vector.broadcast %cst_54 : f32 to vector<1x256xf32>
    %133 = arith.divf %131, %132 : vector<1x256xf32>
    %cst_55 = arith.constant 9.99999974E-6 : f32
    %134 = vector.broadcast %cst_55 : f32 to vector<1x256xf32>
    %135 = arith.addf %133, %134 : vector<1x256xf32>
    %136 = math.rsqrt %135 : vector<1x256xf32>
    %137 = vector.broadcast %136 : vector<1x256xf32> to vector<32x256xf32>
    %138 = arith.mulf %128, %137 : vector<32x256xf32>
    %139 = vector.broadcast %121 : vector<32x1xf32> to vector<32x256xf32>
    %140 = arith.mulf %138, %139 : vector<32x256xf32>
    %141 = vector.broadcast %122 : vector<32x1xf32> to vector<32x256xf32>
    %142 = arith.addf %140, %141 : vector<32x256xf32>
    %cst_56 = arith.constant 5.000000e-01 : f32
    %143 = vector.broadcast %cst_56 : f32 to vector<32x256xf32>
    %144 = arith.mulf %143, %142 : vector<32x256xf32>
    %145 = arith.mulf %142, %142 : vector<32x256xf32>
    %146 = arith.mulf %145, %142 : vector<32x256xf32>
    %cst_57 = arith.constant 4.471500e-02 : f32
    %147 = vector.broadcast %cst_57 : f32 to vector<32x256xf32>
    %148 = arith.mulf %147, %146 : vector<32x256xf32>
    %149 = arith.addf %142, %148 : vector<32x256xf32>
    %cst_58 = arith.constant 0.797884583 : f32
    %150 = vector.broadcast %cst_58 : f32 to vector<32x256xf32>
    %151 = arith.mulf %150, %149 : vector<32x256xf32>
    %152 = math.tanh %151 : vector<32x256xf32>
    %cst_59 = arith.constant 1.000000e+00 : f32
    %153 = vector.broadcast %cst_59 : f32 to vector<32x256xf32>
    %154 = arith.addf %153, %152 : vector<32x256xf32>
    %155 = arith.mulf %144, %154 : vector<32x256xf32>
    %c0_60 = arith.constant 0 : index
    %c0_61 = arith.constant 0 : index
    %156 = vector.load %arg6[%c0_60, %c0_61] : memref<32x32xf32, #tpu.memory_space<vmem>>, vector<32x32xf32>
    %cst_62 = arith.constant dense<0.000000e+00> : vector<32x256xf32>
    %157 = tpu.matmul %156, %92, %cst_62 {dimension_numbers = #tpu.dot_dimension_numbers<[1], [0], [0], [1], [0, 0, 1, 1], [], []>} : vector<32x32xf32>, vector<32x256xf32>, vector<32x256xf32> -> vector<32x256xf32>
    %c0_63 = arith.constant 0 : index
    %c11 = arith.constant 11 : index
    %158 = vector.load %arg3[%c0_63, %c11] : memref<32x18xf32, #tpu.memory_space<vmem>>, vector<32x1xf32>
    %159 = vector.broadcast %158 : vector<32x1xf32> to vector<32x256xf32>
    %160 = arith.addf %157, %159 : vector<32x256xf32>
    %c0_64 = arith.constant 0 : index
    %c12 = arith.constant 12 : index
    %161 = vector.load %arg3[%c0_64, %c12] : memref<32x18xf32, #tpu.memory_space<vmem>>, vector<32x1xf32>
    %c0_65 = arith.constant 0 : index
    %c13 = arith.constant 13 : index
    %162 = vector.load %arg3[%c0_65, %c13] : memref<32x18xf32, #tpu.memory_space<vmem>>, vector<32x1xf32>
    %cst_66 = arith.constant dense<0.000000e+00> : vector<256xf32>
    %163 = vector.multi_reduction <add>, %160, %cst_66 [0] : vector<32x256xf32> to vector<256xf32>
    %164 = vector.shape_cast %163 : vector<256xf32> to vector<1x256xf32>
    %cst_67 = arith.constant 3.200000e+01 : f32
    %165 = vector.broadcast %cst_67 : f32 to vector<1x256xf32>
    %166 = arith.divf %164, %165 : vector<1x256xf32>
    %167 = vector.broadcast %166 : vector<1x256xf32> to vector<32x256xf32>
    %168 = arith.subf %160, %167 : vector<32x256xf32>
    %169 = arith.mulf %168, %168 : vector<32x256xf32>
    %cst_68 = arith.constant dense<0.000000e+00> : vector<256xf32>
    %170 = vector.multi_reduction <add>, %169, %cst_68 [0] : vector<32x256xf32> to vector<256xf32>
    %171 = vector.shape_cast %170 : vector<256xf32> to vector<1x256xf32>
    %cst_69 = arith.constant 3.200000e+01 : f32
    %172 = vector.broadcast %cst_69 : f32 to vector<1x256xf32>
    %173 = arith.divf %171, %172 : vector<1x256xf32>
    %cst_70 = arith.constant 9.99999974E-6 : f32
    %174 = vector.broadcast %cst_70 : f32 to vector<1x256xf32>
    %175 = arith.addf %173, %174 : vector<1x256xf32>
    %176 = math.rsqrt %175 : vector<1x256xf32>
    %177 = vector.broadcast %176 : vector<1x256xf32> to vector<32x256xf32>
    %178 = arith.mulf %168, %177 : vector<32x256xf32>
    %179 = vector.broadcast %161 : vector<32x1xf32> to vector<32x256xf32>
    %180 = arith.mulf %178, %179 : vector<32x256xf32>
    %181 = vector.broadcast %162 : vector<32x1xf32> to vector<32x256xf32>
    %182 = arith.addf %180, %181 : vector<32x256xf32>
    %cst_71 = arith.constant 5.000000e-01 : f32
    %183 = vector.broadcast %cst_71 : f32 to vector<32x256xf32>
    %184 = arith.mulf %183, %182 : vector<32x256xf32>
    %185 = arith.mulf %182, %182 : vector<32x256xf32>
    %186 = arith.mulf %185, %182 : vector<32x256xf32>
    %cst_72 = arith.constant 4.471500e-02 : f32
    %187 = vector.broadcast %cst_72 : f32 to vector<32x256xf32>
    %188 = arith.mulf %187, %186 : vector<32x256xf32>
    %189 = arith.addf %182, %188 : vector<32x256xf32>
    %cst_73 = arith.constant 0.797884583 : f32
    %190 = vector.broadcast %cst_73 : f32 to vector<32x256xf32>
    %191 = arith.mulf %190, %189 : vector<32x256xf32>
    %192 = math.tanh %191 : vector<32x256xf32>
    %cst_74 = arith.constant 1.000000e+00 : f32
    %193 = vector.broadcast %cst_74 : f32 to vector<32x256xf32>
    %194 = arith.addf %193, %192 : vector<32x256xf32>
    %195 = arith.mulf %184, %194 : vector<32x256xf32>
    %196 = arith.addf %155, %195 : vector<32x256xf32>
    %c0_75 = arith.constant 0 : index
    %c14 = arith.constant 14 : index
    %197 = vector.load %arg3[%c0_75, %c14] : memref<32x18xf32, #tpu.memory_space<vmem>>, vector<32x1xf32>
    %198 = vector.broadcast %197 : vector<32x1xf32> to vector<32x256xf32>
    %199 = arith.mulf %196, %198 : vector<32x256xf32>
    %c0_76 = arith.constant 0 : index
    %c15 = arith.constant 15 : index
    %200 = vector.load %arg3[%c0_76, %c15] : memref<32x18xf32, #tpu.memory_space<vmem>>, vector<32x1xf32>
    %c0_77 = arith.constant 0 : index
    %c16 = arith.constant 16 : index
    %201 = vector.load %arg3[%c0_77, %c16] : memref<32x18xf32, #tpu.memory_space<vmem>>, vector<32x1xf32>
    %cst_78 = arith.constant dense<0.000000e+00> : vector<256xf32>
    %202 = vector.multi_reduction <add>, %199, %cst_78 [0] : vector<32x256xf32> to vector<256xf32>
    %203 = vector.shape_cast %202 : vector<256xf32> to vector<1x256xf32>
    %cst_79 = arith.constant 3.200000e+01 : f32
    %204 = vector.broadcast %cst_79 : f32 to vector<1x256xf32>
    %205 = arith.divf %203, %204 : vector<1x256xf32>
    %206 = vector.broadcast %205 : vector<1x256xf32> to vector<32x256xf32>
    %207 = arith.subf %199, %206 : vector<32x256xf32>
    %208 = arith.mulf %207, %207 : vector<32x256xf32>
    %cst_80 = arith.constant dense<0.000000e+00> : vector<256xf32>
    %209 = vector.multi_reduction <add>, %208, %cst_80 [0] : vector<32x256xf32> to vector<256xf32>
    %210 = vector.shape_cast %209 : vector<256xf32> to vector<1x256xf32>
    %cst_81 = arith.constant 3.200000e+01 : f32
    %211 = vector.broadcast %cst_81 : f32 to vector<1x256xf32>
    %212 = arith.divf %210, %211 : vector<1x256xf32>
    %cst_82 = arith.constant 9.99999974E-6 : f32
    %213 = vector.broadcast %cst_82 : f32 to vector<1x256xf32>
    %214 = arith.addf %212, %213 : vector<1x256xf32>
    %215 = math.rsqrt %214 : vector<1x256xf32>
    %216 = vector.broadcast %215 : vector<1x256xf32> to vector<32x256xf32>
    %217 = arith.mulf %207, %216 : vector<32x256xf32>
    %218 = vector.broadcast %200 : vector<32x1xf32> to vector<32x256xf32>
    %219 = arith.mulf %217, %218 : vector<32x256xf32>
    %220 = vector.broadcast %201 : vector<32x1xf32> to vector<32x256xf32>
    %221 = arith.addf %219, %220 : vector<32x256xf32>
    %c0_83 = arith.constant 0 : index
    %c0_84 = arith.constant 0 : index
    %222 = vector.load %arg7[%c0_83, %c0_84] : memref<32x32xf32, #tpu.memory_space<vmem>>, vector<32x32xf32>
    %cst_85 = arith.constant dense<0.000000e+00> : vector<32x256xf32>
    %223 = tpu.matmul %222, %221, %cst_85 {dimension_numbers = #tpu.dot_dimension_numbers<[1], [0], [0], [1], [0, 0, 1, 1], [], []>} : vector<32x32xf32>, vector<32x256xf32>, vector<32x256xf32> -> vector<32x256xf32>
    %224 = arith.addf %1, %223 : vector<32x256xf32>
    %c0_86 = arith.constant 0 : index
    %c17 = arith.constant 17 : index
    %225 = vector.load %arg3[%c0_86, %c17] : memref<32x18xf32, #tpu.memory_space<vmem>>, vector<32x1xf32>
    %226 = vector.broadcast %225 : vector<32x1xf32> to vector<32x256xf32>
    %227 = arith.addf %224, %226 : vector<32x256xf32>
    %c0_87 = arith.constant 0 : index
    %c0_88 = arith.constant 0 : index
    %c0_89 = arith.constant 0 : index
    %228 = vector.load %arg8[%c0_87, %c0_88, %c0_89] : memref<1x32x256xf32, #tpu.memory_space<vmem>>, vector<1x32x256xf32>
    %229 = vector.shape_cast %228 : vector<1x32x256xf32> to vector<32x256xf32>
    %230 = vector.shape_cast %227 : vector<32x256xf32> to vector<1x32x256xf32>
    tpu.vector_store %arg8[%c0_87, %c0_88, %c0_89], %230 {strides = array<i32>} : memref<1x32x256xf32, #tpu.memory_space<vmem>>, vector<1x32x256xf32>,
    return
  }
  func.func @transform_0(%arg0: i32) -> (i32, i32, i32) {
    %c0_i32 = arith.constant 0 : i32
    %c0_i32_0 = arith.constant 0 : i32
    %c0_i32_1 = arith.constant 0 : i32
    return %arg0, %c0_i32, %c0_i32_0 : i32, i32, i32
  }
  func.func @transform_1(%arg0: i32) -> (i32, i32) {
    %c0_i32 = arith.constant 0 : i32
    %c0_i32_0 = arith.constant 0 : i32
    %c0_i32_1 = arith.constant 0 : i32
    return %c0_i32, %c0_i32_0 : i32, i32
  }
  func.func @transform_2(%arg0: i32) -> (i32, i32) {
    %c0_i32 = arith.constant 0 : i32
    %c0_i32_0 = arith.constant 0 : i32
    %c0_i32_1 = arith.constant 0 : i32
    return %c0_i32, %c0_i32_0 : i32, i32
  }
  func.func @transform_3(%arg0: i32) -> (i32, i32) {
    %c0_i32 = arith.constant 0 : i32
    %c0_i32_0 = arith.constant 0 : i32
    %c0_i32_1 = arith.constant 0 : i32
    return %c0_i32, %c0_i32_0 : i32, i32
  }
  func.func @transform_4(%arg0: i32) -> (i32, i32) {
    %c0_i32 = arith.constant 0 : i32
    %c0_i32_0 = arith.constant 0 : i32
    %c0_i32_1 = arith.constant 0 : i32
    return %c0_i32, %c0_i32_0 : i32, i32
  }
  func.func @transform_5(%arg0: i32) -> (i32, i32) {
    %c0_i32 = arith.constant 0 : i32
    %c0_i32_0 = arith.constant 0 : i32
    %c0_i32_1 = arith.constant 0 : i32
    return %c0_i32, %c0_i32_0 : i32, i32
  }
  func.func @transform_6(%arg0: i32) -> (i32, i32) {
    %c0_i32 = arith.constant 0 : i32
    %c0_i32_0 = arith.constant 0 : i32
    %c0_i32_1 = arith.constant 0 : i32
    return %c0_i32, %c0_i32_0 : i32, i32
  }
  func.func @transform_7(%arg0: i32) -> (i32, i32, i32) {
    %c0_i32 = arith.constant 0 : i32
    %c0_i32_0 = arith.constant 0 : i32
    %c0_i32_1 = arith.constant 0 : i32
    return %arg0, %c0_i32, %c0_i32_0 : i32, i32, i32
  }
}

</mosaic_0001>

<bundles_post_ra>
// kernel: tpu_custom_call.1
= control target key start
LH: loop header
LB: loop body
LE: loop exit
PB: predicated region body
PF: predicated region fallthrough
CT: control target
= control target key end

     0   :  { %s4288_s0 = inlined_call_operand.hbm [shape: f32[2,32,256], index: 0, kind: input, shape index: {}]   ;;  %s4289_s1 = inlined_call_operand.hbm [shape: f32[8,256], index: 1, kind: input, shape index: {}]   ;;  %s4290_s2 = inlined_call_operand.vmem [shape: f32[32,18], index: 2, kind: input, shape index: {}]   ;;  %s4291_s3 = inlined_call_operand.vmem [shape: f32[32,32], index: 3, kind: input, shape index: {}]   ;;  %s4292_s4 = inlined_call_operand.hbm [shape: f32[32,32], index: 4, kind: input, shape index: {}]   ;;  %s4293_s5 = inlined_call_operand.vmem [shape: f32[32,32], index: 5, kind: input, shape index: {}]   ;;  %s4294_s6 = inlined_call_operand.hbm [shape: f32[32,32], index: 6, kind: input, shape index: {}]   ;;  %s4295_s7 = inlined_call_operand.hbm [shape: f32[2,32,256], index: 7, kind: output, shape index: {}]  }
   0x1   :  { %4300 = sst [smem:[#allocation15_spill]] %s4289_s1 }
   0x2   :  { %12 = vsyncpa [#allocation3], 0 }
   0x3   :  { %14 = vsyncpa [#allocation3 + $0x1], 0 }
   0x4   :  { %15 = vsyncpa [#allocation6], 0 }
   0x5   :  { %16 = vsyncpa [#allocation9], 0 }
   0x6   :  { %17 = vsyncpa [#allocation4], 0 }
   0x7   :  { %19 = vsyncpa [#allocation4 + $0x1], 0  ;;  %s2993_s24 = smov 0   ;;  %s2995_s25 = smov 0  }
   0x8   :  { %s2997_s26 = smov 0   ;;  %s2999_s27 = smov 0  }
   0x9 LB: > { %s3014_s28 = sadd.s32 4294967295, %s2918_s27   ;;  %s2413_s29 = sadd.s32 4294967294, %s2918_s27   ;;  %s2918_s27 = sphi %s2999_s27, %s4321_s27   ;;  %s2914_s26 = sphi %s2997_s26, %s4320_s26   ;;  %s2910_s25 = sphi %s2995_s25, %s4319_s25   ;;  %s2906_s24 = sphi %s2993_s24, %s4318_s24  }
   0xa   : > { %p45_p0 = scmp.ne.s32.totalorder %s2910_s25, %s2906_s24  ;;  %p4296_p1 = scmp.eq.s32.totalorder %s3014_s28, 0 }
   0xb   : > { %p201_p3 = scmp.eq.s32.totalorder %s2413_s29, 1  ;;  %p2414_p5 = scmp.ge.s32.totalorder %s2918_s27, 1 }
   0xc   : > { %p3023_p4 = por %p4296_p1, %p45_p0  ;;  %p208_p7 = scmp.lt.s32.totalorder %s2918_s27, 3 }
   0xd   : > { %p3028_p6 = por %p201_p3, %p45_p0  ;;  %s2920_s10 = smov [#allocation5]  }
   0xe   : > { %s4301_s30 = scalar_select %p3023_p4, 1, 0 }
   0xf   : > { %s4302_s8 = scalar_select %p3028_p6, 1, 0 }
  0x10   : > { %p3033_p8 = pnand %p2414_p5, %p208_p7  ;;  %s221_s11 = sshll.u32 %s2920_s10, 4  ;;  %s222_s11 = int_to_ptr.vmem [resolvable:$true] %s221_s11 }
  0x11   : > { %s2921_s12 = smov [#allocation7]   ;;  %s2922_s15 = smov [#allocation8]  }
  0x12   : > { %s4303_s9 = scalar_select %p3033_p8, 1, 0 }
  0x13   : > { %p2479_p10 = pneg %p3033_p8  ;;  %s237_s13 = sshll.u32 %s2921_s12, 4  ;;  %s238_s13 = int_to_ptr.vmem [resolvable:$true] %s237_s13 }
  0x14   : > { %s253_s16 = sshll.u32 %s2922_s15, 4  ;;  %s2751_s17 = scalar_lea.vmem %s222_s11, 256  ;;  %s254_s16 = int_to_ptr.vmem [resolvable:$true] %s253_s16 }
  0x15   : > { %p3042_p11 = pnand %p2479_p10, %p4296_p1  ;;  %p2752_p13 = scmp.ne.s32.totalorder %s222_s11, %s2751_s17 }
  0x16   : > { %p2759_p5 = scmp.lt.s32.totalorder %s222_s11, %s222_s11  ;;  %p2760_p7 = scmp.lt.s32.totalorder %s2751_s17, %s2751_s17 }
  0x17   : > { %p2742_p12 = pneg %p3042_p11 }
  0x18   : > { %p2761_p9 = por %p2760_p7, %p2759_p5 }
  0x19   : > { %p2754_p0 = pnand %p2752_p13, %p2742_p12 }
  0x1b   : > { %p2755_p3 = pneg %p2754_p0 }
  0x1d   : > { %p2762_p10 = pnand %p2761_p9, %p2755_p3 }
  0x1f   : > { %2765 = shalt.err (!%p2762_p10)
}
  0x20   : > { %s4305_s1 = sld [smem:[#allocation15_spill]]  ;;  %s2777_s20 = scalar_lea.vmem %s238_s13, 512 }
  0x21   : > { %p2778_p1 = scmp.ne.s32.totalorder %s238_s13, %s2777_s20  ;;  %p2785_p13 = scmp.lt.s32.totalorder %s238_s13, %s238_s13 }
  0x22   : > { %p2786_p0 = scmp.lt.s32.totalorder %s2777_s20, %s2777_s20 }
  0x23   : > { %p2780_p2 = pnand %p2778_p1, %p2742_p12 }
  0x24   : > { %p2787_p4 = por %p2786_p0, %p2785_p13 }
  0x25   : > { %p2781_p6 = pneg %p2780_p2 }
  0x26   : > { %2482 = dma.hbm_to_vmem [thread:$0]  (!%p3042_p11), %s4305_s1, 256, %s222_s11, [#allocation6]  }
  0x27   : > { %p2788_p8 = pnand %p2787_p4, %p2781_p6 }
  0x29   : > { %2791 = shalt.err (!%p2788_p8)
}
  0x2a   : > { %s2923_s21 = smov 128   ;;  %s2924_s22 = smov 8  }
  0x2b   : > { %2485 = dma.hbm_to_vmem [thread:$0]  (!%p3042_p11), %s4292_s4, 512, %s238_s13, [#allocation6], %s2923_s21, %s2923_s21, %s2924_s22  }
  0x2c   : > { %s2803_s10 = scalar_lea.vmem %s254_s16, 512  ;;  %p2811_p3 = scmp.lt.s32.totalorder %s254_s16, %s254_s16 }
  0x2d   : > { %p2804_p9 = scmp.ne.s32.totalorder %s254_s16, %s2803_s10  ;;  %p2812_p5 = scmp.lt.s32.totalorder %s2803_s10, %s2803_s10 }
  0x2f   : > { %p2806_p1 = pnand %p2804_p9, %p2742_p12  ;;  %p2813_p4 = por %p2812_p5, %p2811_p3 }
  0x31   : > { %p2807_p2 = pneg %p2806_p1 }
  0x33   : > { %p2814_p6 = pnand %p2813_p4, %p2807_p2 }
  0x35   : > { %2817 = shalt.err (!%p2814_p6)
}
  0x36   : > { %2488 = dma.hbm_to_vmem [thread:$0]  (!%p3042_p11), %s4294_s6, 512, %s254_s16, [#allocation9], %s2923_s21, %s2923_s21, %s2924_s22  }
  0x37   : > { %s3073_s13 = sadd.s32 1, %s2918_s27   ;;  %s32_s14 = sadd.s32 1, %s2914_s26 }
  0x38   : > { %s29_s15 = ssub.s32 %s2918_s27, %s3073_s13  ;;  %p39_p12 = scmp.ne.s32.totalorder %s2914_s26, %s2910_s25 }
  0x39   : > { %p30_p8 = scmp.eq.s32.totalorder %s29_s15, 0  ;;  %p40_p7 = scmp.eq.s32.totalorder %s2918_s27, 0 }
  0x3a   : > { %p2500_p10 = scmp.lt.s32.totalorder %s2918_s27, 2  ;;  %p4306_p0 = scmp.eq.s32.totalorder %s3014_s28, 1 }
  0x3b   : > { %s3083_s17 = scalar_select %p30_p8, %s2914_s26, %s32_s14  }
  0x3c   : > { %p41_p13 = por %p40_p7, %p39_p12  ;;  %p3087_p9 = por %p4306_p0, %p39_p12 }
  0x3d   : > { %s267_s19 = sand.u32 1, %s2914_s26   ;;  %s2453_s20 = sshll.u32 %s2918_s27, 10 }
  0x3e   : > { %s4307_s18 = scalar_select %p3087_p9, 1, 0 }
  0x3f   : > { %s2419_s16 = sshll.u32 %s267_s19, 6  ;;  %s3096_s23 = scalar_lea.hbm %s4288_s0, %s2453_s20 }
  0x40   : > { %s271_s29 = scalar_lea.vmem [#allocation2], %s2419_s16  ;;  %p3098_p11 = pnand %p2500_p10, %p41_p13 }
  0x41   : > { %s278_s10 = sshll.u32 %s271_s29, 4  ;;  %s3104_s12 = scalar_lea.sflag [#allocation3], %s267_s19  ;;  %s3102_s10 = int_to_ptr.vmem [resolvable:$true] %s278_s10 }
  0x42   : > { %s2818_s15 = scalar_lea.hbm %s3096_s23, 1024  ;;  %p2820_p2 = pneg %p3098_p11 }
  0x43   : > { %p2819_p1 = scmp.ne.s32.totalorder %s3096_s23, %s2818_s15  ;;  %s2823_s16 = scalar_lea.hbm %s4288_s0, 2048 }
  0x44   : > { %p2824_p4 = scmp.lt.s32.totalorder %s3096_s23, %s4288_s0  ;;  %p2825_p6 = scmp.lt.s32.totalorder %s2823_s16, %s2818_s15 }
  0x45   : > { %p2821_p3 = pnand %p2820_p2, %p2819_p1 }
  0x46   : > { %p2826_p8 = por %p2825_p6, %p2824_p4 }
  0x47   : > { %p2822_p5 = pneg %p2821_p3 }
  0x49   : > { %p2827_p12 = pnand %p2826_p8, %p2822_p5 }
  0x4b   : > { %2830 = shalt.err (!%p2827_p12)
}
  0x4c   : > { %s2831_s19 = scalar_lea.vmem %s3102_s10, 1024  ;;  %s2925_s29 = smov [#allocation2]  }
  0x4d   : > { %p2832_p7 = scmp.ne.s32.totalorder %s3102_s10, %s2831_s19  ;;  %s2836_s1 = sshll.u32 %s2925_s29, 4  ;;  %s2837_s1 = int_to_ptr.vmem [resolvable:$false] %s2836_s1 }
  0x4e   : > { %s2838_s14 = scalar_lea.vmem %s2837_s1, 2048  ;;  %p2839_p0 = scmp.lt.s32.totalorder %s3102_s10, %s2837_s1 }
  0x4f   : > { %p2834_p10 = pnand %p2832_p7, %p2820_p2  ;;  %p2840_p1 = scmp.lt.s32.totalorder %s2838_s14, %s2831_s19 }
  0x51   : > { %p2835_p13 = pneg %p2834_p10  ;;  %p2841_p3 = por %p2840_p1, %p2839_p0 }
  0x53   : > { %p2842_p9 = pnand %p2841_p3, %p2835_p13 }
  0x55   : > { %2845 = shalt.err (!%p2842_p9)
}
  0x56   : > { %s2926_s15 = smov 256   ;;  %s2927_s20 = smov 16  }
  0x57   : > { %2492 = dma.hbm_to_vmem [thread:$0]  (!%p3098_p11), %s3096_s23, 1024, %s3102_s10, %s3104_s12, %s2926_s15, %s2926_s15, %s2927_s20  }
  0x58   : > { %p4309_p2 = scmp.ne.s32.totalorder %s4303_s9, 0 }
  0x59   : > { %s3128_s16 = sand.u32 (!%p4309_p2), 1, %s2910_s25   ;;  %p4310_p9 = scmp.ne.s32.totalorder (!%p4309_p2), %s4301_s30, 0 }
  0x5a   : > { %290 = sbr.rel (%p4309_p2) target bundleno = 1457 (0x5b1), region = 48  ;;  %s2423_s1 = sshll.u32 (!%p4309_p2), %s3128_s16, 6 }
  0x5b   : > { %s293_s21 = scalar_lea.sflag (!%p4309_p2), [#allocation3], %s3128_s16  ;;  %s3134_s22 = scalar_lea.vmem (!%p4309_p2), [#allocation2], %s2423_s1 }
  0x5f   : > { %2889 = dma.done.wait (%p4310_p9), %s293_s21, 1024  }
  0x60   : > { %2891 = vsyncadd (%p4310_p9), %s293_s21, 4294966272  ;;  %p4311_p11 = scmp.eq.s32.totalorder %s3014_s28, 0 }
  0x62   : > { %2893 = dma.done.wait (%p4311_p11), [#allocation6], 768   ;;  %p4312_p5 = pmov %p4311_p11 }
  0x64   : > { %2895 = vsyncadd (%p4312_p5), [#allocation6], 4294966528  ;;  %p4313_p4 = pmov %p4312_p5 }
  0x66   : > { %2897 = dma.done.wait (%p4313_p4), [#allocation9], 512   ;;  %p4314_p6 = pmov %p4313_p4 }
  0x67   : > { %v2928_v0 = vmov 1   ;;  %v2929_v1 = vmov 0   ;;  %v3151_v2 = vld [vmem:[%s4290_s2 + $0x18] sm:$0xff]  ;;  %v3154_v3 = vld [vmem:[%s3134_s22 + $0x30] sm:$0xff]  ;;  %s2930_s23 = smov 1   ;;  %v3173_v6 = vld [vmem:[%s3134_s22 + $0x20] sm:$0xff]  ;;  %v365_v33 = vlaneseq }
  0x68   : > { %2899 = vsyncadd (%p4314_p6), [#allocation9], 4294966784  ;;  %2568 = vset.pattern.permute.xlu0 %v2928_v0  ;;  %2569 = vset.pattern.permute.xlu1 %v2929_v1  ;;  %v3162_v4 = vld [vmem:[%s4290_s2 + $0x10] sm:$0xff]  ;;  %v3165_v5 = vld [vmem:[%s3134_s22 + $0x38] sm:$0xff]  ;;  %v2931_v7 = vmov 2   ;;  %s2932_s12 = smov 127  }
  0x69   : > { %486 = vperm.xlu0 %2568, %v3151_v2   ;;  %355 = vrot.lane.b32.xlu1 %v3154_v3, %s2930_s23  ;;  %v3179_v8 = vld [vmem:[%s3134_s22 + $0x28] sm:$0xff]  ;;  %v3191_v10 = vld [vmem:[%s3134_s22 + $0x10] sm:$0xff]  ;;  %v441_v11 = vld [vmem:[%s4290_s2] sm:$0xff]  ;;  %v2933_v14 = vmov 6   ;;  %v2934_v16 = vmov 4   ;;  %v2935_v17 = vmov 3  }
  0x6a   : > { %v442_v9 = vld [vmem:[%s4290_s2 + $0x8] sm:$0xff]  ;;  %v3202_v12 = vld [vmem:[%s3134_s22 + $0x18] sm:$0xff]  ;;  %v3217_v15 = vld [vmem:[%s3134_s22] sm:$0xff]  ;;  %v2936_v18 = vmov 7   ;;  %v2937_v19 = vmov 5   ;;  %v2938_v28 = vmov 0.0  }
  0x6b   : > { %v3209_v13 = vld [vmem:[%s3134_s22 + $0x8] sm:$0xff]  ;;  %1054 = vmatprep.mubr.f32.mxu1 %v2938_v28  ;;  %1042 = vmatprep.mubr.f32.mxu0 %v2938_v28  ;;  %v378_v36 = vshrl.u32 %v365_v33, 7  ;;  %v3242_v37 = vand.u32 127, %v365_v33  ;;  %vm965_vm2 = vcmask 261120   ;;  %s2939_s10 = smov 16   ;;  %s2940_s11 = smov 112  }
  0x6c   : > { %v348_v42 = vld [vmem:[#allocation5 + $0x4] ss:$8 sm:$0x3]  ;;  %v396_v43 = vld [vmem:[#allocation5 + $0x5] ss:$8 sm:$0x3] }
  0x6d   : > { %482 = vperm.xlu0 %2568, %v3162_v4   ;;  %363 = vrot.lane.b32.xlu1 %v3165_v5, %s2930_s23  ;;  %v3244_v39 = vsub.s32 0, %v378_v36  ;;  %v3246_v40 = vsub.s32 1, %v378_v36  ;;  %vm367_vm0 = vcmp.lt.s32.totalorder %v3242_v37, 1  ;;  %vm413_vm1 = vcmp.lt.s32.totalorder %v3242_v37, 127  ;;  %s4222_s30 = scalar_lea.vmem [#allocation10], %s2423_s1  ;;  %s2454_s9 = sshll.u32 %s3014_s28, 10 }
  0x6e   : > { %vm1279_vm3 = vcmp.lt.s32.totalorder %v3242_v37, 16  ;;  %vm1333_vm4 = vcmp.lt.s32.totalorder %v3242_v37, 112  ;;  %s2311_s1 = sshll.u32 %s4222_s30, 4  ;;  %s4243_s29 = scalar_lea.hbm %s4295_s7, %s2454_s9  ;;  %s4237_s1 = int_to_ptr.vmem [resolvable:$true] %s2311_s1 }
  0x6f   : > { %v3253_v45 = vrot.slane %v348_v42, %v3244_v39  ;;  %v3256_v46 = vrot.slane %v348_v42, %v3246_v40  ;;  %v3259_v47 = vrot.slane %v396_v43, %v3244_v39  ;;  %v3262_v48 = vrot.slane %v396_v43, %v3246_v40  ;;  %s2846_s14 = scalar_lea.vmem %s4237_s1, 1024  ;;  %p4315_p12 = scmp.ne.s32.totalorder %s4307_s18, 0 }
  0x70   : > { %p2847_p8 = scmp.ne.s32.totalorder %s4237_s1, %s2846_s14  ;;  %s2951_s28 = smov [#allocation10]  }
  0x71   : > { %2570 = vset.pattern.permute.xlu0 %v2929_v1  ;;  %457 = vperm.xlu1 %2569, %v3162_v4  }
  0x72   : > { %462 = vperm.xlu0 %2570, %v3151_v2   ;;  %p2848_p7 = pnand %p2847_p8, %p4315_p12 }
  0x74   : > { %p2849_p10 = pneg %p2848_p7 }
  0x75   : > { %2571 = vset.pattern.permute.xlu1 %v2931_v7 }
  0x76   : > { %518 = vperm.xlu1 %2571, %v3151_v2   ;;  %353 = vrot.lane.b32.xlu0 %v3173_v6, %s2930_s23 }
  0x7a   : > { %361 = vrot.lane.b32.xlu1 %v3179_v8, %s2930_s23  ;;  %403 = vrot.lane.b32.xlu0 %v3154_v3, %s2932_s12 }
  0x7b   : > { %2572 = vset.pattern.permute.xlu1 %v2928_v0 }
  0x7e   : > { %411 = vrot.lane.b32.xlu1 %v3165_v5, %s2932_s12  ;;  %452 = vperm.xlu0 %2570, %v442_v9  }
  0x82   : > { %478 = vperm.xlu1 %2572, %v442_v9   ;;  %351 = vrot.lane.b32.xlu0 %v3191_v10, %s2930_s23 }
  0x86   : > { %2573 = vset.pattern.permute.xlu1 %v2931_v7  ;;  %401 = vrot.lane.b32.xlu0 %v3173_v6, %s2932_s12 }
  0x87   : > { %514 = vperm.xlu1 %2573, %v3162_v4  }
  0x8a   : > { %447 = vperm.xlu0 %2570, %v441_v11  }
  0x8b   : > { %359 = vrot.lane.b32.xlu1 %v3202_v12, %s2930_s23 }
  0x8c   : > { %2574 = vset.pattern.permute.xlu1 %v2928_v0 }
  0x8e   : > { %2575 = vset.pattern.permute.xlu0 %v2931_v7 }
  0x8f   : > { %409 = vrot.lane.b32.xlu1 %v3179_v8, %s2932_s12  ;;  %510 = vperm.xlu0 %2575, %v442_v9  }
  0x93   : > { %474 = vperm.xlu1 %2574, %v441_v11   ;;  %357 = vrot.lane.b32.xlu0 %v3209_v13, %s2930_s23 }
  0x94   : > { %2578 = vset.pattern.permute.xlu0 %v2933_v14 }
  0x97   : > { %2576 = vset.pattern.permute.xlu1 %v2933_v14  ;;  %407 = vrot.lane.b32.xlu0 %v3202_v12, %s2932_s12 }
  0x98   : > { %550 = vperm.xlu1 %2576, %v3151_v2  }
  0x9b   : > { %546 = vperm.xlu0 %2578, %v3162_v4  }
  0x9c   : > { %349 = vrot.lane.b32.xlu1 %v3217_v15, %s2930_s23 }
  0x9d   : > { %2577 = vset.pattern.permute.xlu1 %v2931_v7 }
  0x9f   : > { %542 = vperm.xlu0 %2578, %v442_v9  }
  0xa0   : > { %399 = vrot.lane.b32.xlu1 %v3191_v10, %s2932_s12 }
  0xa3   : > { %2582 = vset.pattern.permute.xlu0 %v2934_v16 }
  0xa4   : > { %738 = vperm.xlu0 %2582, %v3162_v4   ;;  %506 = vperm.xlu1 %2577, %v441_v11  }
  0xa8   : > { %734 = vperm.xlu0 %2582, %v442_v9   ;;  %397 = vrot.lane.b32.xlu1 %v3217_v15, %s2932_s12 }
  0xa9   : > { %2579 = vset.pattern.permute.xlu1 %v2933_v14 }
  0xac   : > { %2585 = vset.pattern.permute.xlu0 %v2935_v17  ;;  %405 = vrot.lane.b32.xlu1 %v3209_v13, %s2932_s12 }
  0xad   : > { %718 = vperm.xlu0 %2585, %v3151_v2  }
  0xb0   : > { %538 = vperm.xlu1 %2579, %v441_v11  }
  0xb1   : > { %706 = vperm.xlu0 %2585, %v441_v11  }
  0xb4   : > { %2580 = vset.pattern.permute.xlu1 %v2934_v16 }
  0xb5   : > { %742 = vperm.xlu1 %2580, %v3151_v2   ;;  %2589 = vset.pattern.permute.xlu0 %v2936_v18 }
  0xb6   : > { %806 = vperm.xlu0 %2589, %v3151_v2  }
  0xb9   : > { %2581 = vset.pattern.permute.xlu1 %v2935_v17 }
  0xba   : > { %714 = vperm.xlu1 %2581, %v3162_v4   ;;  %798 = vperm.xlu0 %2589, %v442_v9  }
  0xbe   : > { %2583 = vset.pattern.permute.xlu1 %v2937_v19 }
  0xbf   : > { %774 = vperm.xlu1 %2583, %v3151_v2  }
  0xc3   : > { %2584 = vset.pattern.permute.xlu1 %v2935_v17 }
  0xc4   : > { %710 = vperm.xlu1 %2584, %v442_v9  }
  0xc8   : > { %2586 = vset.pattern.permute.xlu1 %v2937_v19 }
  0xc9   : > { %770 = vperm.xlu1 %2586, %v3162_v4  }
  0xcd   : > { %2587 = vset.pattern.permute.xlu1 %v2934_v16 }
  0xce   : > { %730 = vperm.xlu1 %2587, %v441_v11  }
  0xd2   : > { %2588 = vset.pattern.permute.xlu1 %v2937_v19 }
  0xd3   : > { %766 = vperm.xlu1 %2588, %v442_v9  }
  0xd7   : > { %762 = vperm.xlu1 %2588, %v441_v11  }
  0xdb   : > { %2590 = vset.pattern.permute.xlu1 %v2936_v18  ;;  %v356_v20 = vpop.permute.xlu1 %355 }
  0xdc   : > { %802 = vperm.xlu1 %2590, %v3162_v4  }
  0xdf   : > { %v364_v22 = vpop.permute.xlu1 %363 }
  0xe0   : > { %794 = vperm.xlu1 %2590, %v441_v11   ;;  %v371_v50 = vsel %vm367_vm0, %v356_v20, %v364_v22  ;;  %v375_v51 = vsel %vm367_vm0, %v364_v22, %v356_v20 }
  0xe1   : > { %v3277_v56 = vmul.f32 %v3253_v45, %v375_v51  ;;  %v3280_v57 = vmul.f32 %v3256_v46, %v371_v50 }
  0xe4   : > { %v487_v21 = vpop.permute.xlu0 %486 }
  0xe5   : > { %v495_v2 = vmul.f32 %v487_v21, %v3154_v3  ;;  %v496_v4 = vmul.f32 %v487_v21, %v3165_v5 }
  0xe8   : > { %v483_v23 = vpop.permute.xlu0 %482 }
  0xec   : > { %v458_v24 = vpop.permute.xlu1 %457 }
  0xed   : > { %v463_v25 = vpop.permute.xlu0 %462 }
  0xee   : > { %v471_v7 = vmul.f32 %v463_v25, %v3277_v56  ;;  %v472_v9 = vmul.f32 %v463_v25, %v3280_v57  ;;  %v493_v25 = vmul.f32 %v483_v23, %v3173_v6 }
  0xf0   : > { %v503_v22 = vadd.f32 %v495_v2, %v471_v7 }
  0xf1   : > { %v519_v26 = vpop.permute.xlu1 %518  ;;  %v354_v27 = vpop.permute.xlu0 %353 }
  0xf5   : > { %v362_v29 = vpop.permute.xlu1 %361  ;;  %v404_v30 = vpop.permute.xlu0 %403 }
  0xf6   : > { %v370_v54 = vsel %vm367_vm0, %v354_v27, %v362_v29  ;;  %v374_v55 = vsel %vm367_vm0, %v362_v29, %v354_v27  ;;  %v504_v27 = vadd.f32 %v496_v4, %v472_v9  ;;  %v494_v29 = vmul.f32 %v483_v23, %v3179_v8 }
  0xf7   : > { %v3291_v62 = vmul.f32 %v3253_v45, %v374_v55  ;;  %v3294_v63 = vmul.f32 %v3256_v46, %v370_v54 }
  0xf9   : > { %v412_v31 = vpop.permute.xlu1 %411  ;;  %v3238_v32 = vpop.permute.xlu0 %452  ;;  %v469_v20 = vmul.f32 %v458_v24, %v3291_v62  ;;  %v470_v21 = vmul.f32 %v458_v24, %v3294_v63 }
  0xfa   : > { %v417_v52 = vsel %vm413_vm1, %v404_v30, %v412_v31  ;;  %v421_v53 = vsel %vm413_vm1, %v412_v31, %v404_v30 }
  0xfb   : > { %v3283_v58 = vmul.f32 %v3259_v47, %v417_v52  ;;  %v3286_v59 = vmul.f32 %v3262_v48, %v421_v53  ;;  %v501_v43 = vadd.f32 %v493_v25, %v469_v20  ;;  %v502_v50 = vadd.f32 %v494_v29, %v470_v21 }
  0xfd   : > { %v3240_v34 = vpop.permute.xlu1 %478  ;;  %v352_v35 = vpop.permute.xlu0 %351  ;;  %v527_v16 = vmul.f32 %v519_v26, %v3283_v58  ;;  %v528_v17 = vmul.f32 %v519_v26, %v3286_v59 }
  0xfe   : > { %v491_v21 = vmul.f32 %v3240_v34, %v3191_v10 }
  0xff   : > { %v535_v36 = vadd.f32 %v527_v16, %v503_v22  ;;  %v536_v26 = vadd.f32 %v528_v17, %v504_v27 }
 0x101   : > { %v402_v38 = vpop.permute.xlu0 %401 }
 0x102   : > { %v515_v41 = vpop.permute.xlu1 %514 }
 0x105   : > { %v3250_v44 = vpop.permute.xlu0 %447 }
 0x106   : > { %v360_v49 = vpop.permute.xlu1 %359 }
 0x107   : > { %v369_v24 = vsel %vm367_vm0, %v352_v35, %v360_v49 }
 0x10a   : > { %v410_v60 = vpop.permute.xlu1 %409  ;;  %v3288_v61 = vpop.permute.xlu0 %510 }
 0x10b   : > { %v416_v0 = vsel %vm413_vm1, %v402_v38, %v410_v60  ;;  %v420_v1 = vsel %vm413_vm1, %v410_v60, %v402_v38  ;;  %v373_v38 = vsel %vm367_vm0, %v360_v49, %v352_v35 }
 0x10c   : > { %v3305_v11 = vmul.f32 %v3259_v47, %v416_v0  ;;  %v3308_v14 = vmul.f32 %v3262_v48, %v420_v1  ;;  %v3336_v0 = vmul.f32 %v3256_v46, %v369_v24 }
 0x10e   : > { %v3312_v18 = vpop.permute.xlu1 %474  ;;  %v358_v19 = vpop.permute.xlu0 %357  ;;  %v525_v30 = vmul.f32 %v515_v41, %v3305_v11  ;;  %v526_v31 = vmul.f32 %v515_v41, %v3308_v14  ;;  %v3329_v41 = vmul.f32 %v3253_v45, %v373_v38  ;;  %v468_v22 = vmul.f32 %v3238_v32, %v3336_v0 }
 0x110   : > { %v533_v23 = vadd.f32 %v525_v30, %v501_v43  ;;  %v534_v53 = vadd.f32 %v526_v31, %v502_v50  ;;  %v467_v16 = vmul.f32 %v3238_v32, %v3329_v41  ;;  %v492_v50 = vmul.f32 %v3240_v34, %v3202_v12 }
 0x112   : > { %v408_v33 = vpop.permute.xlu0 %407 }
 0x113   : > { %v551_v42 = vpop.permute.xlu1 %550 }
 0x114   : > { %v3324_v51 = vadd.f32 %v551_v42, %v535_v36  ;;  %v3326_v52 = vadd.f32 %v551_v42, %v536_v26 }
 0x116   : > { %v575_v54 = vmul.f32 %v3324_v51, %v3324_v51  ;;  %v576_v55 = vmul.f32 %v3326_v52, %v3326_v52  ;;  %v547_v60 = vpop.permute.xlu0 %546 }
 0x117   : > { %v3338_v35 = vadd.f32 %v547_v60, %v533_v23  ;;  %v3340_v49 = vadd.f32 %v547_v60, %v534_v53  ;;  %v350_v1 = vpop.permute.xlu1 %349  ;;  %v499_v53 = vadd.f32 %v491_v21, %v467_v16 }
 0x118   : > { %v583_v2 = vmul.f32 %v575_v54, %v3324_v51  ;;  %v584_v4 = vmul.f32 %v576_v55, %v3326_v52  ;;  %v372_v34 = vsel %vm367_vm0, %v358_v19, %v350_v1 }
 0x119   : > { %v573_v7 = vmul.f32 %v3338_v35, %v3338_v35  ;;  %v574_v9 = vmul.f32 %v3340_v49, %v3340_v49 }
 0x11a   : > { %v591_v17 = vmul.f32 0.044715, %v583_v2  ;;  %v592_v20 = vmul.f32 0.044715, %v584_v4  ;;  %v368_v4 = vsel %vm367_vm0, %v350_v1, %v358_v19 }
 0x11b   : > { %v581_v27 = vmul.f32 %v573_v7, %v3338_v35  ;;  %v582_v25 = vmul.f32 %v574_v9, %v3340_v49  ;;  %v400_v29 = vpop.permute.xlu1 %399  ;;  %v500_v7 = vadd.f32 %v492_v50, %v468_v22  ;;  %v543_v9 = vpop.permute.xlu0 %542  ;;  %v490_v50 = vmul.f32 %v3312_v18, %v3209_v13 }
 0x11c   : > { %v599_v30 = vadd.f32 %v591_v17, %v3324_v51  ;;  %v600_v31 = vadd.f32 %v592_v20, %v3326_v52  ;;  %v415_v36 = vsel %vm413_vm1, %v400_v29, %v408_v33  ;;  %v419_v26 = vsel %vm413_vm1, %v408_v33, %v400_v29 }
 0x11d   : > { %v589_v38 = vmul.f32 0.044715, %v581_v27  ;;  %v590_v42 = vmul.f32 0.044715, %v582_v25  ;;  %v3363_v43 = vmul.f32 %v3259_v47, %v415_v36  ;;  %v3366_v32 = vmul.f32 %v3262_v48, %v419_v26 }
 0x11e   : > { %v607_v24 = vmul.f32 0.7978846, %v599_v30  ;;  %v608_v23 = vmul.f32 0.7978846, %v600_v31  ;;  %v3386_v30 = vmul.f32 %v3253_v45, %v372_v34 }
 0x11f   : > { %v597_v54 = vadd.f32 %v589_v38, %v3338_v35  ;;  %v598_v55 = vadd.f32 %v590_v42, %v3340_v49  ;;  %v523_v33 = vmul.f32 %v3288_v61, %v3363_v43  ;;  %v524_v60 = vmul.f32 %v3288_v61, %v3366_v32  ;;  %v507_v2 = vpop.permute.xlu1 %506  ;;  %v3390_v22 = vpop.permute.xlu0 %738 }
 0x120   : > { %2620 = vtanh.f32 %v607_v24  ;;  %v3381_v61 = vmul.f32 %v3256_v46, %v368_v4  ;;  %v465_v42 = vmul.f32 %v3250_v44, %v3386_v30 }
 0x121   : > { %2622 = vtanh.f32 %v608_v23  ;;  %v605_v16 = vmul.f32 0.7978846, %v597_v54  ;;  %v606_v17 = vmul.f32 0.7978846, %v598_v55  ;;  %v531_v20 = vadd.f32 %v523_v33, %v499_v53 }
 0x122   : > { %v532_v21 = vadd.f32 %v524_v60, %v500_v7  ;;  %v466_v26 = vmul.f32 %v3250_v44, %v3381_v61  ;;  %v489_v54 = vmul.f32 %v3312_v18, %v3217_v15 }
 0x123   : > { %2624 = vtanh.f32 %v605_v16  ;;  %v555_v27 = vadd.f32 %v543_v9, %v531_v20  ;;  %v398_v25 = vpop.permute.xlu1 %397 }
 0x124   : > { %2626 = vtanh.f32 %v606_v17  ;;  %v3383_v29 = vadd.f32 %v543_v9, %v532_v21  ;;  %v498_v44 = vadd.f32 %v490_v50, %v466_v26  ;;  %v3414_v9 = vpop.permute.xlu0 %734  ;;  %v566_v50 = vmul.f32 0.5, %v3340_v49 }
 0x125   : > { %v571_v19 = vmul.f32 %v555_v27, %v555_v27 }
 0x126   : > { %v572_v1 = vmul.f32 %v3383_v29, %v3383_v29 }
 0x127   : > { %v579_v31 = vmul.f32 %v571_v19, %v555_v27  ;;  %v406_v36 = vpop.permute.xlu1 %405  ;;  %v567_v19 = vmul.f32 0.5, %v3324_v51 }
 0x128   : > { %v580_v46 = vmul.f32 %v572_v1, %v3383_v29  ;;  %v414_v38 = vsel %vm413_vm1, %v398_v25, %v406_v36  ;;  %v418_v45 = vsel %vm413_vm1, %v406_v36, %v398_v25 }
 0x129   : > { %v587_v24 = vmul.f32 0.044715, %v579_v31  ;;  %v3404_v23 = vmul.f32 %v3259_v47, %v414_v38  ;;  %v3407_v53 = vmul.f32 %v3262_v48, %v418_v45  ;;  %v497_v47 = vadd.f32 %v489_v54, %v465_v42  ;;  %v719_v54 = vpop.permute.xlu0 %718 }
 0x12a   : > { %v588_v55 = vmul.f32 0.044715, %v580_v46  ;;  %v568_v38 = vmul.f32 0.5, %v3326_v52 }
 0x12b   : > { %v595_v33 = vadd.f32 %v587_v24, %v555_v27  ;;  %v521_v60 = vmul.f32 %v507_v2, %v3404_v23  ;;  %v522_v4 = vmul.f32 %v507_v2, %v3407_v53  ;;  %v539_v34 = vpop.permute.xlu1 %538 }
 0x12c   : > { %v596_v7 = vadd.f32 %v588_v55, %v3383_v29 }
 0x12d   : > { %v2621_v16 = vpop.eup %2620  ;;  %v603_v17 = vmul.f32 0.7978846, %v595_v33  ;;  %v530_v48 = vadd.f32 %v522_v4, %v498_v44  ;;  %v529_v25 = vadd.f32 %v521_v60, %v497_v47  ;;  %v565_v4 = vmul.f32 0.5, %v3338_v35 }
 0x12e   : > { %v2623_v20 = vpop.eup %2622  ;;  %v604_v21 = vmul.f32 0.7978846, %v596_v7  ;;  %v623_v18 = vadd.f32 1.0, %v2621_v16 }
 0x12f   : > { %2628 = vtanh.f32 %v603_v17  ;;  %v3417_v1 = vadd.f32 %v539_v34, %v530_v48  ;;  %v624_v2 = vadd.f32 1.0, %v2623_v20  ;;  %v3419_v36 = vadd.f32 %v539_v34, %v529_v25 }
 0x130   : > { %v2625_v31 = vpop.eup %2624  ;;  %2630 = vtanh.f32 %v604_v21  ;;  %v743_v26 = vpop.permute.xlu1 %742  ;;  %v3424_v42 = vmul.f32 %v623_v18, %v567_v19  ;;  %v563_v34 = vmul.f32 0.5, %v555_v27  ;;  %v564_v19 = vmul.f32 0.5, %v3383_v29 }
 0x131   : > { %v2627_v46 = vpop.eup %2626  ;;  %v570_v45 = vmul.f32 %v3417_v1, %v3417_v1  ;;  %v621_v51 = vadd.f32 1.0, %v2625_v31  ;;  %v569_v55 = vmul.f32 %v3419_v36, %v3419_v36  ;;  %v3430_v60 = vmul.f32 %v624_v2, %v568_v38 }
 0x132   : > { %v622_v24 = vadd.f32 1.0, %v2627_v46  ;;  %v647_v16 = vmul.f32 %v3424_v42, %v3424_v42  ;;  %v751_v20 = vmul.f32 %v743_v26, %v3154_v3  ;;  %v752_v35 = vmul.f32 %v743_v26, %v3165_v5  ;;  %v707_v46 = vpop.permute.xlu0 %706 }
 0x133   : > { %v578_v33 = vmul.f32 %v570_v45, %v3417_v1  ;;  %v577_v44 = vmul.f32 %v569_v55, %v3419_v36  ;;  %v648_v49 = vmul.f32 %v3430_v60, %v3430_v60  ;;  %v3442_v17 = vmul.f32 %v621_v51, %v565_v4 }
 0x134   : > { %v3433_v52 = vmul.f32 %v622_v24, %v566_v50  ;;  %v655_v25 = vmul.f32 %v647_v16, %v3424_v42  ;;  %v727_v2 = vmul.f32 %v719_v54, %v3277_v56  ;;  %v728_v31 = vmul.f32 %v719_v54, %v3280_v57 }
 0x135   : > { %v586_v7 = vmul.f32 0.044715, %v578_v33  ;;  %v3436_v47 = vpop.permute.xlu1 %714  ;;  %v585_v48 = vmul.f32 0.044715, %v577_v44  ;;  %v656_v27 = vmul.f32 %v648_v49, %v3430_v60  ;;  %v645_v33 = vmul.f32 %v3442_v17, %v3442_v17 }
 0x136   : > { %v646_v18 = vmul.f32 %v3433_v52, %v3433_v52  ;;  %v663_v26 = vmul.f32 0.044715, %v655_v25  ;;  %v759_v51 = vadd.f32 %v751_v20, %v727_v2  ;;  %v760_v24 = vadd.f32 %v752_v35, %v728_v31  ;;  %v807_v4 = vpop.permute.xlu0 %806 }
 0x137   : > { %v594_v21 = vadd.f32 %v586_v7, %v3417_v1  ;;  %v593_v3 = vadd.f32 %v585_v48, %v3419_v36  ;;  %v664_v5 = vmul.f32 0.044715, %v656_v27  ;;  %v653_v49 = vmul.f32 %v645_v33, %v3442_v17 }
 0x138   : > { %v654_v45 = vmul.f32 %v646_v18, %v3433_v52  ;;  %v671_v44 = vadd.f32 %v663_v26, %v3424_v42  ;;  %v750_v26 = vmul.f32 %v3390_v22, %v3179_v8 }
 0x139   : > { %v602_v38 = vmul.f32 0.7978846, %v594_v21  ;;  %v601_v50 = vmul.f32 0.7978846, %v593_v3  ;;  %v672_v29 = vadd.f32 %v664_v5, %v3430_v60  ;;  %v749_v5 = vmul.f32 %v3390_v22, %v3173_v6 }
 0x13a   : > { %v775_v55 = vpop.permute.xlu1 %774  ;;  %v662_v7 = vmul.f32 0.044715, %v654_v45  ;;  %v679_v25 = vmul.f32 0.7978846, %v671_v44  ;;  %v3488_v22 = vmul.f32 %v707_v46, %v3381_v61 }
 0x13b   : > { %2632 = vtanh.f32 %v602_v38  ;;  %v783_v56 = vmul.f32 %v775_v55, %v3283_v58  ;;  %v784_v57 = vmul.f32 %v775_v55, %v3286_v59  ;;  %v680_v21 = vmul.f32 0.7978846, %v672_v29 }
 0x13c   : > { %v2629_v54 = vpop.eup %2628  ;;  %2634 = vtanh.f32 %v601_v50  ;;  %v670_v58 = vadd.f32 %v662_v7, %v3433_v52  ;;  %v661_v59 = vmul.f32 0.044715, %v653_v49  ;;  %v3482_v55 = vmul.f32 %v707_v46, %v3386_v30 }
 0x13d   : > { %v2631_v16 = vpop.eup %2630  ;;  %v619_v48 = vadd.f32 1.0, %v2629_v54  ;;  %v791_v20 = vadd.f32 %v783_v56, %v759_v51  ;;  %v792_v35 = vadd.f32 %v784_v57, %v760_v24  ;;  %2636 = vtanh.f32 %v680_v21 }
 0x13e   : > { %v620_v27 = vadd.f32 1.0, %v2631_v16  ;;  %2638 = vtanh.f32 %v679_v25  ;;  %v747_v51 = vmul.f32 %v3414_v9, %v3191_v10  ;;  %v678_v24 = vmul.f32 0.7978846, %v670_v58 }
 0x13f   : > { %v815_v18 = vadd.f32 %v807_v4, %v791_v20  ;;  %v3464_v2 = vadd.f32 %v807_v4, %v792_v35  ;;  %v711_v31 = vpop.permute.xlu1 %710  ;;  %v3466_v3 = vmul.f32 %v619_v48, %v563_v34  ;;  %v748_v34 = vmul.f32 %v3414_v9, %v3202_v12 }
 0x140   : > { %v3468_v38 = vmul.f32 %v620_v27, %v564_v19  ;;  %v669_v19 = vadd.f32 %v661_v59, %v3442_v17  ;;  %2640 = vtanh.f32 %v678_v24  ;;  %v561_v9 = vmul.f32 0.5, %v3419_v36 }
 0x141   : > { %v831_v45 = vmul.f32 %v815_v18, %v815_v18  ;;  %v832_v50 = vmul.f32 %v3464_v2, %v3464_v2  ;;  %v643_v12 = vmul.f32 %v3466_v3, %v3466_v3  ;;  %v562_v30 = vmul.f32 0.5, %v3417_v1 }
 0x142   : > { %v644_v8 = vmul.f32 %v3468_v38, %v3468_v38  ;;  %v677_v10 = vmul.f32 0.7978846, %v669_v19  ;;  %v725_v54 = vmul.f32 %v3436_v47, %v3291_v62  ;;  %v726_v4 = vmul.f32 %v3436_v47, %v3294_v63 }
 0x143   : > { %v839_v6 = vmul.f32 %v831_v45, %v815_v18  ;;  %v840_v33 = vmul.f32 %v832_v50, %v3464_v2  ;;  %v651_v46 = vmul.f32 %v643_v12, %v3466_v3  ;;  %v639_v36 = vmul.f32 0.5, %v3424_v42 }
 0x144   : > { %v3490_v56 = vpop.permute.xlu1 %770  ;;  %2642 = vtanh.f32 %v677_v10  ;;  %v652_v61 = vmul.f32 %v644_v8, %v3468_v38  ;;  %v640_v1 = vmul.f32 0.5, %v3430_v60  ;;  %v638_v16 = vmul.f32 0.5, %v3433_v52 }
 0x145   : > { %v847_v57 = vmul.f32 0.044715, %v839_v6  ;;  %v848_v29 = vmul.f32 0.044715, %v840_v33  ;;  %v659_v62 = vmul.f32 0.044715, %v651_v46  ;;  %v723_v25 = vmul.f32 %v711_v31, %v3329_v41 }
 0x146   : > { %v660_v48 = vmul.f32 0.044715, %v652_v61  ;;  %v757_v47 = vadd.f32 %v749_v5, %v725_v54  ;;  %v724_v59 = vmul.f32 %v711_v31, %v3336_v0  ;;  %v758_v60 = vadd.f32 %v750_v26, %v726_v4 }
 0x147   : > { %v855_v44 = vadd.f32 %v847_v57, %v815_v18  ;;  %v856_v7 = vadd.f32 %v848_v29, %v3464_v2  ;;  %v667_v52 = vadd.f32 %v659_v62, %v3466_v3  ;;  %v3514_v19 = vmul.f32 0.5, %v815_v18 }
 0x148   : > { %v2633_v49 = vpop.eup %2632  ;;  %v668_v42 = vadd.f32 %v660_v48, %v3468_v38  ;;  %v637_v41 = vmul.f32 0.5, %v3442_v17  ;;  %v755_v5 = vadd.f32 %v747_v51, %v723_v25  ;;  %v756_v8 = vadd.f32 %v748_v34, %v724_v59  ;;  %v799_v51 = vpop.permute.xlu0 %798 }
 0x149   : > { %v2635_v20 = vpop.eup %2634  ;;  %v618_v35 = vadd.f32 1.0, %v2633_v49  ;;  %v863_v21 = vmul.f32 0.7978846, %v855_v44  ;;  %v864_v27 = vmul.f32 0.7978846, %v856_v7  ;;  %v731_v58 = vpop.permute.xlu1 %730  ;;  %v824_v61 = vmul.f32 0.5, %v3464_v2 }
 0x14a   : > { %v617_v63 = vadd.f32 1.0, %v2635_v20  ;;  %v2637_v50 = vpop.eup %2636  ;;  %v676_v0 = vmul.f32 0.7978846, %v668_v42  ;;  %v675_v31 = vmul.f32 0.7978846, %v667_v52  ;;  %v781_v46 = vmul.f32 %v3490_v56, %v3305_v11 }
 0x14b   : > { %v3509_v45 = vmul.f32 %v618_v35, %v562_v30  ;;  %2644 = vtanh.f32 %v863_v21  ;;  %v2639_v6 = vpop.eup %2638  ;;  %v696_v33 = vadd.f32 1.0, %v2637_v50  ;;  %v745_v48 = vmul.f32 %v731_v58, %v3217_v15 }
 0x14c   : > { %v3512_v24 = vmul.f32 %v617_v63, %v561_v9  ;;  %2646 = vtanh.f32 %v864_v27  ;;  %v695_v12 = vadd.f32 1.0, %v2639_v6  ;;  %v746_v2 = vmul.f32 %v731_v58, %v3209_v13 }
 0x14d   : > { %v642_v26 = vmul.f32 %v3509_v45, %v3509_v45  ;;  %v704_v30 = vmul.f32 %v696_v33, %v640_v1  ;;  %2648 = vtanh.f32 %v676_v0  ;;  %v2641_v54 = vpop.eup %2640  ;;  %v789_v25 = vadd.f32 %v781_v46, %v757_v47 }
 0x14e   : > { %v767_v10 = vpop.permute.xlu1 %766  ;;  %v641_v9 = vmul.f32 %v3512_v24, %v3512_v24  ;;  %v703_v17 = vmul.f32 %v695_v12, %v639_v36  ;;  %2650 = vtanh.f32 %v675_v31  ;;  %v694_v44 = vadd.f32 1.0, %v2641_v54 }
 0x14f   : > { %v779_v18 = vmul.f32 %v767_v10, %v3363_v43  ;;  %v780_v57 = vmul.f32 %v767_v10, %v3366_v32  ;;  %v650_v29 = vmul.f32 %v642_v26, %v3509_v45  ;;  %1002 = vmatprep.subr.mxu0 %v704_v30  ;;  %2455 = vmatprep.subr.mxu1 %v704_v30  ;;  %v636_v30 = vmul.f32 0.5, %v3468_v38 }
 0x150   : > { %v649_v34 = vmul.f32 %v641_v9, %v3512_v24  ;;  %v782_v32 = vmul.f32 %v3490_v56, %v3308_v14  ;;  %1003 = vmatpush1.msra.mxu0 %v703_v17  ;;  %2459 = vmatpush1.msra.mxu1 %v703_v17  ;;  %v702_v20 = vmul.f32 %v694_v44, %v638_v16 }
 0x151   : > { %v787_v4 = vadd.f32 %v779_v18, %v755_v5  ;;  %v788_v43 = vadd.f32 %v780_v57, %v756_v8  ;;  %v658_v36 = vmul.f32 0.044715, %v650_v29  ;;  %v2643_v1 = vpop.eup %2642  ;;  %v753_v59 = vadd.f32 %v745_v48, %v3482_v55 }
 0x152   : > { %v763_v7 = vpop.permute.xlu1 %762  ;;  %v657_v49 = vmul.f32 0.044715, %v649_v34  ;;  %v693_v35 = vadd.f32 1.0, %v2643_v1  ;;  %1004 = vmatprep.subr.mxu0 %v702_v20  ;;  %2456 = vmatprep.subr.mxu1 %v702_v20  ;;  %v790_v16 = vadd.f32 %v782_v32, %v758_v60  ;;  %v754_v33 = vadd.f32 %v746_v2, %v3488_v22 }
 0x153   : > { %v3532_v62 = vadd.f32 %v799_v51, %v787_v4  ;;  %v3534_v11 = vadd.f32 %v799_v51, %v788_v43  ;;  %v666_v21 = vadd.f32 %v658_v36, %v3509_v45  ;;  %v777_v15 = vmul.f32 %v763_v7, %v3404_v23 }
 0x154   : > { %v665_v14 = vadd.f32 %v657_v49, %v3512_v24  ;;  %v701_v13 = vmul.f32 %v693_v35, %v637_v41  ;;  %v778_v58 = vmul.f32 %v763_v7, %v3407_v53 }
 0x155   : > { %v827_v56 = vmul.f32 %v3532_v62, %v3532_v62  ;;  %v828_v27 = vmul.f32 %v3534_v11, %v3534_v11  ;;  %v674_v63 = vmul.f32 0.7978846, %v666_v21  ;;  %v785_v55 = vadd.f32 %v777_v15, %v753_v59 }
 0x156   : > { %v673_v6 = vmul.f32 0.7978846, %v665_v14  ;;  %1005 = vmatpush1.msra.mxu0 %v701_v13  ;;  %2460 = vmatpush1.msra.mxu1 %v701_v13  ;;  %v786_v10 = vadd.f32 %v778_v58, %v754_v33 }
 0x157   : > { %v835_v42 = vmul.f32 %v827_v56, %v3532_v62  ;;  %v836_v52 = vmul.f32 %v828_v27, %v3534_v11  ;;  %v803_v50 = vpop.permute.xlu1 %802  ;;  %2652 = vtanh.f32 %v674_v63 }
 0x158   : > { %v2645_v5 = vpop.eup %2644  ;;  %v3548_v23 = vadd.f32 %v803_v50, %v789_v25  ;;  %v3550_v47 = vadd.f32 %v803_v50, %v790_v16  ;;  %2654 = vtanh.f32 %v673_v6  ;;  %v634_v50 = vmul.f32 0.5, %v3509_v45  ;;  %v3598_v45 = vld [vmem:[%s4291_s3] sm:$0xff] }
 0x159   : > { %v2647_v53 = vpop.eup %2646  ;;  %v843_v60 = vmul.f32 0.044715, %v835_v42  ;;  %v844_v41 = vmul.f32 0.044715, %v836_v52  ;;  %v879_v0 = vadd.f32 1.0, %v2645_v5  ;;  %v633_v5 = vmul.f32 0.5, %v3512_v24 }
 0x15a   : > { %v880_v31 = vadd.f32 1.0, %v2647_v53  ;;  %v829_v8 = vmul.f32 %v3548_v23, %v3548_v23  ;;  %v830_v26 = vmul.f32 %v3550_v47, %v3550_v47  ;;  %v2649_v18 = vpop.eup %2648 }
 0x15b   : > { %v851_v22 = vadd.f32 %v843_v60, %v3532_v62  ;;  %v852_v12 = vadd.f32 %v844_v41, %v3534_v11  ;;  %v795_v9 = vpop.permute.xlu1 %794  ;;  %v2651_v34 = vpop.eup %2650  ;;  %v692_v43 = vadd.f32 1.0, %v2649_v18  ;;  %v3568_v32 = vmul.f32 %v879_v0, %v3514_v19  ;;  %v3616_v18 = vld [vmem:[%s4291_s3 + $0x8] sm:$0xff] }
 0x15c   : > { %v3559_v57 = vmul.f32 %v880_v31, %v824_v61  ;;  %v837_v17 = vmul.f32 %v829_v8, %v3548_v23  ;;  %v3562_v51 = vadd.f32 %v795_v9, %v785_v55  ;;  %v3564_v29 = vadd.f32 %v795_v9, %v786_v10  ;;  %v3593_v31 = vld [vmem:[%s4291_s3 + $0x10] sm:$0xff] }
 0x15d   : > { %v859_v54 = vmul.f32 0.7978846, %v851_v22  ;;  %v860_v46 = vmul.f32 0.7978846, %v852_v12  ;;  %v838_v4 = vmul.f32 %v830_v26, %v3550_v47  ;;  %v635_v61 = vmul.f32 0.5, %v3466_v3 }
 0x15e   : > { %v845_v44 = vmul.f32 0.044715, %v837_v17  ;;  %v825_v38 = vmul.f32 %v3562_v51, %v3562_v51  ;;  %v826_v36 = vmul.f32 %v3564_v29, %v3564_v29  ;;  %v700_v49 = vmul.f32 %v692_v43, %v636_v30  ;;  %v3610_v30 = vld [vmem:[%s4291_s3 + $0x18] sm:$0xff] }
 0x15f   : > { %2656 = vtanh.f32 %v859_v54  ;;  %v846_v7 = vmul.f32 0.044715, %v838_v4  ;;  %v691_v2 = vadd.f32 1.0, %v2651_v34  ;;  %v904_v3 = vmul.f32 %v3559_v57, %v3559_v57 }
 0x160   : > { %2658 = vtanh.f32 %v860_v46  ;;  %v853_v1 = vadd.f32 %v845_v44, %v3548_v23  ;;  %v833_v48 = vmul.f32 %v825_v38, %v3562_v51  ;;  %v834_v20 = vmul.f32 %v826_v36, %v3564_v29  ;;  %1006 = vmatprep.subr.mxu0 %v700_v49  ;;  %2457 = vmatprep.subr.mxu1 %v700_v49 }
 0x161   : > { %v854_v19 = vadd.f32 %v846_v7, %v3550_v47  ;;  %v699_v14 = vmul.f32 %v691_v2, %v635_v61  ;;  %v912_v15 = vmul.f32 %v904_v3, %v3559_v57  ;;  %v903_v25 = vmul.f32 %v3568_v32, %v3568_v32 }
 0x162   : > { %v861_v35 = vmul.f32 0.7978846, %v853_v1  ;;  %v841_v21 = vmul.f32 0.044715, %v833_v48  ;;  %v842_v27 = vmul.f32 0.044715, %v834_v20 }
 0x163   : > { %v862_v56 = vmul.f32 0.7978846, %v854_v19  ;;  %1007 = vmatpush1.msra.mxu0 %v699_v14  ;;  %2461 = vmatpush1.msra.mxu1 %v699_v14  ;;  %v920_v63 = vmul.f32 0.044715, %v912_v15  ;;  %v911_v59 = vmul.f32 %v903_v25, %v3568_v32  ;;  %v819_v26 = vmul.f32 0.5, %v3532_v62 }
 0x164   : > { %2660 = vtanh.f32 %v861_v35  ;;  %v849_v13 = vadd.f32 %v841_v21, %v3562_v51  ;;  %v2653_v58 = vpop.eup %2652  ;;  %v850_v16 = vadd.f32 %v842_v27, %v3564_v29  ;;  %v820_v17 = vmul.f32 0.5, %v3534_v11 }
 0x165   : > { %2662 = vtanh.f32 %v862_v56  ;;  %v2655_v42 = vpop.eup %2654  ;;  %v690_v6 = vadd.f32 1.0, %v2653_v58  ;;  %v928_v60 = vadd.f32 %v920_v63, %v3559_v57  ;;  %v919_v41 = vmul.f32 0.044715, %v911_v59 }
 0x166   : > { %v857_v52 = vmul.f32 0.7978846, %v849_v13  ;;  %v858_v33 = vmul.f32 0.7978846, %v850_v16  ;;  %v689_v53 = vadd.f32 1.0, %v2655_v42  ;;  %v821_v43 = vmul.f32 0.5, %v3548_v23 }
 0x167   : > { %v698_v55 = vmul.f32 %v690_v6, %v634_v50  ;;  %v936_v24 = vmul.f32 0.7978846, %v928_v60  ;;  %v927_v8 = vadd.f32 %v919_v41, %v3568_v32  ;;  %v822_v61 = vmul.f32 0.5, %v3550_v47 }
 0x168   : > { %2664 = vtanh.f32 %v857_v52  ;;  %v697_v0 = vmul.f32 %v689_v53, %v633_v5  ;;  %v817_v3 = vmul.f32 0.5, %v3562_v51  ;;  %v818_v14 = vmul.f32 0.5, %v3564_v29 }
 0x169   : > { %2666 = vtanh.f32 %v858_v33  ;;  %1008 = vmatprep.subr.mxu0 %v698_v55  ;;  %2458 = vmatprep.subr.mxu1 %v698_v55  ;;  %v935_v10 = vmul.f32 0.7978846, %v927_v8  ;;  %v896_v63 = vmul.f32 0.5, %v3559_v57  ;;  %v895_v52 = vmul.f32 0.5, %v3568_v32 }
 0x16a   : > { %1009 = vmatpush1.msra.mxu0 %v697_v0  ;;  %2462 = vmatpush1.msra.mxu1 %v697_v0  ;;  %2668 = vtanh.f32 %v936_v24 }
 0x16b   : > { %2430 = vmatmul.mubr.msk.f32.vlgmr.msra.gmra.mxu1 %vm965_vm2, %v3593_v31  ;;  %2428 = vmatmul.mubr.msk.f32.vlgmr.msra.gmra.mxu0 %vm965_vm2, %v3598_v45  ;;  %2670 = vtanh.f32 %v935_v10 }
 0x16c   : > { %v2657_v22 = vpop.eup %2656  ;;  %1060 = vmatprep.mubr.f32.mxu1 %v2938_v28  ;;  %1048 = vmatprep.mubr.f32.mxu0 %v2938_v28 }
 0x16d   : > { %v2659_v12 = vpop.eup %2658  ;;  %v875_v9 = vadd.f32 1.0, %v2657_v22 }
 0x16e   : > { %v876_v34 = vadd.f32 1.0, %v2659_v12 }
 0x16f   : > { %v3619_v62 = vmul.f32 %v875_v9, %v819_v26  ;;  %2431 = vmatmul.mubr.msk.f32.gmra.mxu1 %vm965_vm2, %v3610_v30  ;;  %2429 = vmatmul.mubr.msk.f32.gmra.mxu0 %vm965_vm2, %v3616_v18 }
 0x170   : > { %v3621_v54 = vmul.f32 %v876_v34, %v820_v17  ;;  %1131 = vmatprep.mubr.f32.mxu1 %v2938_v28  ;;  %1481 = vmatprep.mubr.f32.mxu0 %v2938_v28 }
 0x171   : > { %v2661_v46 = vpop.eup %2660  ;;  %v899_v4 = vmul.f32 %v3619_v62, %v3619_v62 }
 0x172   : > { %v2663_v11 = vpop.eup %2662  ;;  %v877_v44 = vadd.f32 1.0, %v2661_v46  ;;  %v900_v38 = vmul.f32 %v3621_v54, %v3621_v54 }
 0x173   : > { %v878_v7 = vadd.f32 1.0, %v2663_v11  ;;  %v907_v36 = vmul.f32 %v899_v4, %v3619_v62 }
 0x174   : > { %v885_v49 = vmul.f32 %v877_v44, %v821_v43  ;;  %v908_v1 = vmul.f32 %v900_v38, %v3621_v54 }
 0x175   : > { %v2665_v48 = vpop.eup %2664  ;;  %v886_v2 = vmul.f32 %v878_v7, %v822_v61  ;;  %v915_v19 = vmul.f32 0.044715, %v907_v36 }
 0x176   : > { %v2667_v20 = vpop.eup %2666  ;;  %v873_v35 = vadd.f32 1.0, %v2665_v48  ;;  %v901_v23 = vmul.f32 %v885_v49, %v885_v49  ;;  %v916_v21 = vmul.f32 0.044715, %v908_v1  ;;  %v893_v44 = vmul.f32 0.5, %v885_v49 }
 0x177   : > { %v874_v56 = vadd.f32 1.0, %v2667_v20  ;;  %v902_v27 = vmul.f32 %v886_v2, %v886_v2  ;;  %v923_v47 = vadd.f32 %v915_v19, %v3619_v62  ;;  %v2669_v15 = vpop.eup %2668  ;;  %v894_v61 = vmul.f32 0.5, %v886_v2 }
 0x178   : > { %v881_v25 = vmul.f32 %v873_v35, %v817_v3  ;;  %v909_v13 = vmul.f32 %v901_v23, %v885_v49  ;;  %v924_v58 = vadd.f32 %v916_v21, %v3621_v54  ;;  %v952_v59 = vadd.f32 1.0, %v2669_v15  ;;  %v2671_v51 = vpop.eup %2670 }
 0x179   : > { %v882_v16 = vmul.f32 %v874_v56, %v818_v14  ;;  %v910_v42 = vmul.f32 %v902_v27, %v886_v2  ;;  %v931_v6 = vmul.f32 0.7978846, %v923_v47  ;;  %v951_v33 = vadd.f32 1.0, %v2671_v51 }
 0x17a   : > { %v917_v50 = vmul.f32 0.044715, %v909_v13  ;;  %v897_v29 = vmul.f32 %v881_v25, %v881_v25  ;;  %v960_v5 = vmul.f32 %v952_v59, %v896_v63  ;;  %v932_v60 = vmul.f32 0.7978846, %v924_v58 }
 0x17b   : > { %v918_v53 = vmul.f32 0.044715, %v910_v42  ;;  %v898_v55 = vmul.f32 %v882_v16, %v882_v16  ;;  %v959_v0 = vmul.f32 %v951_v33, %v895_v52  ;;  %2672 = vtanh.f32 %v931_v6  ;;  %v1695_v6 = vld [vmem:[%s4293_s5] sm:$0xff]  ;;  %v1698_v33 = vld [vmem:[%s4293_s5 + $0x18] sm:$0xff] }
 0x17c   : > { %v925_v41 = vadd.f32 %v917_v50, %v885_v49  ;;  %1091 = vmatprep.subr.mxu1 %v960_v5  ;;  %v905_v8 = vmul.f32 %v897_v29, %v881_v25  ;;  %2674 = vtanh.f32 %v932_v60  ;;  %v892_v20 = vmul.f32 0.5, %v3621_v54  ;;  %v1696_v29 = vld [vmem:[%s4293_s5 + $0x8] sm:$0xff]  ;;  %v1697_v5 = vld [vmem:[%s4293_s5 + $0x10] sm:$0xff] }
 0x17d   : > { %v926_v24 = vadd.f32 %v918_v53, %v886_v2  ;;  %v906_v57 = vmul.f32 %v898_v55, %v882_v16  ;;  %1092 = vmatpush1.msra.mxu1 %v959_v0  ;;  %v891_v35 = vmul.f32 0.5, %v3619_v62  ;;  %v889_v14 = vmul.f32 0.5, %v881_v25  ;;  %v1156_v53 = vld [vmem:[#allocation5] ss:$8 sm:$0x3] }
 0x17e   : > { %v933_v10 = vmul.f32 0.7978846, %v925_v41  ;;  %v913_v32 = vmul.f32 0.044715, %v905_v8  ;;  %v890_v49 = vmul.f32 0.5, %v882_v16  ;;  %v3725_v41 = vrot.slane %v1156_v53, %v3244_v39 }
 0x17f   : > { %v934_v22 = vmul.f32 0.7978846, %v926_v24  ;;  %v914_v12 = vmul.f32 0.044715, %v906_v57  ;;  %v3728_v55 = vrot.slane %v1156_v53, %v3246_v40 }
 0x180   : > { %2676 = vtanh.f32 %v933_v10  ;;  %v921_v26 = vadd.f32 %v913_v32, %v881_v25  ;;  %v1209_v0 = vld [vmem:[#allocation5 + $0x1] ss:$8 sm:$0x3] }
 0x181   : > { %2678 = vtanh.f32 %v934_v22  ;;  %v922_v9 = vadd.f32 %v914_v12, %v882_v16  ;;  %v3737_v12 = vrot.slane %v1209_v0, %v3244_v39 }
 0x182   : > { %v929_v17 = vmul.f32 0.7978846, %v921_v26  ;;  %v3740_v26 = vrot.slane %v1209_v0, %v3246_v40 }
 0x183   : > { %v930_v34 = vmul.f32 0.7978846, %v922_v9 }
 0x184   : > { %2680 = vtanh.f32 %v929_v17 }
 0x185   : > { %2682 = vtanh.f32 %v930_v34 }
 0x188   : > { %v2673_v46 = vpop.eup %2672 }
 0x189   : > { %v2675_v4 = vpop.eup %2674  ;;  %v947_v48 = vadd.f32 1.0, %v2673_v46 }
 0x18a   : > { %v948_v36 = vadd.f32 1.0, %v2675_v4 }
 0x18b   : > { %v955_v27 = vmul.f32 %v947_v48, %v891_v35 }
 0x18c   : > { %v956_v21 = vmul.f32 %v948_v36, %v892_v20 }
 0x18d   : > { %v2677_v11 = vpop.eup %2676 }
 0x18e   : > { %v2679_v43 = vpop.eup %2678  ;;  %v949_v38 = vadd.f32 1.0, %v2677_v11 }
 0x18f   : > { %v950_v7 = vadd.f32 1.0, %v2679_v43 }
 0x190   : > { %v957_v1 = vmul.f32 %v949_v38, %v893_v44 }
 0x191   : > { %v958_v19 = vmul.f32 %v950_v7, %v894_v61  ;;  %v2681_v3 = vpop.eup %2680 }
 0x192   : > { %v2683_v23 = vpop.eup %2682  ;;  %v945_v56 = vadd.f32 1.0, %v2681_v3 }
 0x193   : > { %1093 = vmatprep.subr.mxu1 %v958_v19  ;;  %v946_v47 = vadd.f32 1.0, %v2683_v23 }
 0x194   : > { %1094 = vmatpush1.msra.mxu1 %v957_v1  ;;  %v953_v2 = vmul.f32 %v945_v56, %v889_v14 }
 0x195   : > { %1095 = vmatprep.subr.mxu1 %v956_v21  ;;  %v954_v15 = vmul.f32 %v946_v47, %v890_v49  ;;  %v2941_v49 = vmov 8  }
 0x196   : > { %1096 = vmatpush1.msra.mxu1 %v955_v27  ;;  %2591 = vset.pattern.permute.xlu1 %v2941_v49 }
 0x197   : > { %1097 = vmatprep.subr.mxu1 %v954_v15 }
 0x198   : > { %1098 = vmatpush1.msra.mxu1 %v953_v2 }
 0x199   : > { %2432 = vmatmul.mubr.msk.f32.vlgmr.msra.gmra.mxu1 %vm965_vm2, %v3598_v45 }
 0x19a   : > { %1137 = vmatprep.mubr.f32.mxu1 %v2938_v28 }
 0x19d   : > { %2433 = vmatmul.mubr.msk.f32.gmra.mxu1 %vm965_vm2, %v3616_v18 }
 0x19e   : > { %1143 = vmatprep.mubr.f32.mxu1 %v2938_v28 }
 0x1a1   : > { %2434 = vmatmul.mubr.msk.f32.gmra.mxu1 %vm965_vm2, %v3593_v31 }
 0x1a2   : > { %1149 = vmatprep.mubr.f32.mxu1 %v2938_v28 }
 0x1a5   : > { %2435 = vmatmul.mubr.msk.f32.gmra.mxu1 %vm965_vm2, %v3610_v30 }
 0x1a6   : > { %1791 = vmatprep.mubr.f32.mxu1 %v2938_v28 }
 0x22b   : > { %v3657_v62 = vpop.f32.mrf.mxu1  ;;  %v3667_v31 = vpop.f32.mrf.mxu0 }
 0x22c   : > { %1161 = vrot.lane.b32.xlu0 %v3657_v62, %s2930_s23 }
 0x22d   : > { %v3661_v45 = vpop.f32.mrf.mxu1  ;;  %v3673_v30 = vpop.f32.mrf.mxu0 }
 0x22e   : > { %1169 = vrot.lane.b32.xlu1 %v3661_v45, %s2930_s23 }
 0x22f   : > { %v3675_v18 = vpop.f32.mrf.mxu1  ;;  %v3687_v25 = vpop.f32.mrf.mxu0 }
 0x230   : > { %1214 = vrot.lane.b32.xlu0 %v3657_v62, %s2932_s12 }
 0x231   : > { %v3681_v54 = vpop.f32.mrf.mxu1  ;;  %v3693_v13 = vpop.f32.mrf.mxu0 }
 0x232   : > { %1222 = vrot.lane.b32.xlu1 %v3661_v45, %s2932_s12 }
 0x234   : > { %1157 = vrot.lane.b32.xlu0 %v3667_v31, %s2930_s23 }
 0x236   : > { %1165 = vrot.lane.b32.xlu1 %v3673_v30, %s2930_s23 }
 0x238   : > { %1163 = vrot.lane.b32.xlu0 %v3675_v18, %s2930_s23 }
 0x23a   : > { %1171 = vrot.lane.b32.xlu1 %v3681_v54, %s2930_s23 }
 0x23c   : > { %1216 = vrot.lane.b32.xlu0 %v3675_v18, %s2932_s12 }
 0x23e   : > { %1224 = vrot.lane.b32.xlu1 %v3681_v54, %s2932_s12 }
 0x240   : > { %1159 = vrot.lane.b32.xlu0 %v3687_v25, %s2930_s23 }
 0x242   : > { %1167 = vrot.lane.b32.xlu1 %v3693_v13, %s2930_s23  ;;  %s2298_s23 = scalar_lea.sflag [#allocation4], %s3128_s16 }
 0x244   : > { %1212 = vrot.lane.b32.xlu0 %v3687_v25, %s2932_s12 }
 0x246   : > { %1220 = vrot.lane.b32.xlu1 %v3693_v13, %s2932_s12 }
 0x248   : > { %1210 = vrot.lane.b32.xlu0 %v3667_v31, %s2932_s12 }
 0x24a   : > { %1218 = vrot.lane.b32.xlu1 %v3673_v30, %s2932_s12 }
 0x259   : > { %v1133_v58 = vpop.f32.mrf.mxu1 }
 0x25b   : > { %v1135_v16 = vpop.f32.mrf.mxu1 }
 0x25d   : > { %v1139_v63 = vpop.f32.mrf.mxu1 }
 0x25f   : > { %v1141_v59 = vpop.f32.mrf.mxu1 }
 0x261   : > { %v1145_v42 = vpop.f32.mrf.mxu1 }
 0x263   : > { %v1147_v51 = vpop.f32.mrf.mxu1 }
 0x265   : > { %v1151_v52 = vpop.f32.mrf.mxu1 }
 0x267   : > { %v1153_v50 = vpop.f32.mrf.mxu1 }
 0x268   : > { %1751 = vmatprep.subr.mxu1 %v1153_v50  ;;  %v2942_v50 = vmov 11  }
 0x269   : > { %1752 = vmatpush1.msra.mxu1 %v1151_v52  ;;  %2593 = vset.pattern.permute.xlu0 %v2942_v50 }
 0x26a   : > { %1753 = vmatprep.subr.mxu1 %v1147_v51 }
 0x26b   : > { %1754 = vmatpush1.msra.mxu1 %v1145_v42 }
 0x26c   : > { %1755 = vmatprep.subr.mxu1 %v1141_v59 }
 0x26d   : > { %1756 = vmatpush1.msra.mxu1 %v1139_v63 }
 0x26e   : > { %1757 = vmatprep.subr.mxu1 %v1135_v16 }
 0x26f   : > { %1758 = vmatpush1.msra.mxu1 %v1133_v58 }
 0x270   : > { %2440 = vmatmul.mubr.msk.f32.vlgmr.msra.gmra.mxu1 %vm965_vm2, %v1695_v6 }
 0x271   : > { %1797 = vmatprep.mubr.f32.mxu1 %v2938_v28 }
 0x274   : > { %2441 = vmatmul.mubr.msk.f32.gmra.mxu1 %vm965_vm2, %v1696_v29 }
 0x275   : > { %1803 = vmatprep.mubr.f32.mxu1 %v2938_v28 }
 0x278   : > { %2442 = vmatmul.mubr.msk.f32.gmra.mxu1 %vm965_vm2, %v1697_v5 }
 0x279   : > { %1809 = vmatprep.mubr.f32.mxu1 %v2938_v28 }
 0x27c   : > { %2443 = vmatmul.mubr.msk.f32.gmra.mxu1 %vm965_vm2, %v1698_v33 }
 0x29e   : > { %v1162_v60 = vpop.permute.xlu0 %1161 }
 0x2a0   : > { %v1170_v24 = vpop.permute.xlu1 %1169 }
 0x2a1   : > { %v1175_v8 = vsel %vm367_vm0, %v1162_v60, %v1170_v24  ;;  %v1179_v10 = vsel %vm367_vm0, %v1170_v24, %v1162_v60 }
 0x2a2   : > { %v1196_v57 = vmul.f32 %v3725_v41, %v1179_v10  ;;  %v1197_v22 = vmul.f32 %v3728_v55, %v1175_v8  ;;  %v1215_v32 = vpop.permute.xlu0 %1214 }
 0x2a4   : > { %v1223_v9 = vpop.permute.xlu1 %1222  ;;  %v1204_v46 = vadd.f32 %v1196_v57, %v3657_v62  ;;  %v1205_v4 = vadd.f32 %v1197_v22, %v3661_v45 }
 0x2a5   : > { %v1228_v17 = vsel %vm413_vm1, %v1215_v32, %v1223_v9  ;;  %v1232_v34 = vsel %vm413_vm1, %v1223_v9, %v1215_v32 }
 0x2a6   : > { %v1249_v11 = vmul.f32 %v3737_v12, %v1228_v17  ;;  %v1250_v43 = vmul.f32 %v3740_v26, %v1232_v34  ;;  %v1158_v44 = vpop.permute.xlu0 %1157 }
 0x2a8   : > { %v1166_v38 = vpop.permute.xlu1 %1165  ;;  %v3750_v61 = vadd.f32 %v1249_v11, %v1204_v46  ;;  %v3752_v7 = vadd.f32 %v1250_v43, %v1205_v4 }
 0x2a9   : > { %v1173_v35 = vsel %vm367_vm0, %v1158_v44, %v1166_v38  ;;  %v1177_v23 = vsel %vm367_vm0, %v1166_v38, %v1158_v44 }
 0x2aa   : > { %v1164_v36 = vpop.permute.xlu0 %1163  ;;  %1267 = vrot.lane.b32.xlu0 %v3750_v61, %s2939_s10  ;;  %1275 = vrot.lane.b32.xlu1 %v3752_v7, %s2939_s10  ;;  %v1192_v14 = vmul.f32 %v3725_v41, %v1177_v23  ;;  %v1193_v56 = vmul.f32 %v3728_v55, %v1173_v35  ;;  %v2947_v35 = vmov 14  }
 0x2ac   : > { %v1172_v1 = vpop.permute.xlu1 %1171  ;;  %v1200_v15 = vadd.f32 %v1192_v14, %v3667_v31  ;;  %v1201_v58 = vadd.f32 %v1193_v56, %v3673_v30  ;;  %v1262_v14 = vld [vmem:[#allocation5 + $0x2] ss:$8 sm:$0x3] }
 0x2ad   : > { %v1176_v47 = vsel %vm367_vm0, %v1164_v36, %v1172_v1  ;;  %v1180_v2 = vsel %vm367_vm0, %v1172_v1, %v1164_v36  ;;  %v3857_v36 = vld [vmem:[%s4290_s2 + $0x18] sm:$0xff]  ;;  %v3863_v1 = vld [vmem:[%s4290_s2 + $0x10] sm:$0xff] }
 0x2ae   : > { %v1217_v48 = vpop.permute.xlu0 %1216  ;;  %1321 = vrot.lane.b32.xlu0 %v3750_v61, %s2940_s11  ;;  %1329 = vrot.lane.b32.xlu1 %v3752_v7, %s2940_s11  ;;  %v1198_v6 = vmul.f32 %v3725_v41, %v1180_v2  ;;  %v1199_v29 = vmul.f32 %v3728_v55, %v1176_v47  ;;  %v1296_v47 = vrot.slane %v1262_v14, %v3246_v40 }
 0x2b0   : > { %v1225_v19 = vpop.permute.xlu1 %1224  ;;  %v1206_v8 = vadd.f32 %v1198_v6, %v3675_v18  ;;  %v1207_v10 = vadd.f32 %v1199_v29, %v3681_v54 }
 0x2b1   : > { %v1229_v59 = vsel %vm413_vm1, %v1217_v48, %v1225_v19  ;;  %v1233_v42 = vsel %vm413_vm1, %v1225_v19, %v1217_v48  ;;  %v2943_v48 = vmov 9   ;;  %v2944_v19 = vmov 10  }
 0x2b2   : > { %v1160_v20 = vpop.permute.xlu0 %1159  ;;  %v1251_v53 = vmul.f32 %v3737_v12, %v1229_v59  ;;  %v1252_v60 = vmul.f32 %v3740_v26, %v1233_v42 }
 0x2b4   : > { %v1168_v3 = vpop.permute.xlu1 %1167  ;;  %v3802_v32 = vadd.f32 %v1252_v60, %v1207_v10  ;;  %v3804_v9 = vadd.f32 %v1251_v53, %v1206_v8 }
 0x2b5   : > { %v1174_v57 = vsel %vm367_vm0, %v1160_v20, %v1168_v3  ;;  %v1178_v22 = vsel %vm367_vm0, %v1168_v3, %v1160_v20  ;;  %v2945_v20 = vmov 12   ;;  %v2946_v3 = vmov 13  }
 0x2b6   : > { %v1213_v21 = vpop.permute.xlu0 %1212  ;;  %v1194_v46 = vmul.f32 %v3725_v41, %v1178_v22  ;;  %v1195_v4 = vmul.f32 %v3728_v55, %v1174_v57 }
 0x2b8   : > { %v1221_v27 = vpop.permute.xlu1 %1220  ;;  %v1202_v44 = vadd.f32 %v1194_v46, %v3687_v25  ;;  %v1203_v38 = vadd.f32 %v1195_v4, %v3693_v13 }
 0x2b9   : > { %v1227_v17 = vsel %vm413_vm1, %v1213_v21, %v1221_v27  ;;  %v1231_v34 = vsel %vm413_vm1, %v1221_v27, %v1213_v21 }
 0x2ba   : > { %v1211_v16 = vpop.permute.xlu0 %1210  ;;  %v1247_v11 = vmul.f32 %v3737_v12, %v1227_v17  ;;  %v1248_v43 = vmul.f32 %v3740_v26, %v1231_v34 }
 0x2bc   : > { %v1219_v63 = vpop.permute.xlu1 %1218  ;;  %v3824_v41 = vadd.f32 %v1248_v43, %v1203_v38  ;;  %v3826_v55 = vadd.f32 %v1247_v11, %v1202_v44 }
 0x2bd   : > { %v1226_v51 = vsel %vm413_vm1, %v1211_v16, %v1219_v63  ;;  %v1230_v52 = vsel %vm413_vm1, %v1219_v63, %v1211_v16  ;;  %v1292_v63 = vrot.slane %v1262_v14, %v3244_v39 }
 0x2be   : > { %v1245_v5 = vmul.f32 %v3737_v12, %v1226_v51  ;;  %v1246_v33 = vmul.f32 %v3740_v26, %v1230_v52  ;;  %v3843_v12 = vld [vmem:[%s4290_s2 + $0x8] sm:$0xff]  ;;  %v3850_v26 = vld [vmem:[%s4290_s2] sm:$0xff] }
 0x2c0   : > { %v3788_v0 = vadd.f32 %v1246_v33, %v1201_v58  ;;  %v3790_v24 = vadd.f32 %v1245_v5, %v1200_v15 }
 0x2c2   : > { %1271 = vrot.lane.b32.xlu1 %v3788_v0, %s2939_s10  ;;  %1263 = vrot.lane.b32.xlu0 %v3790_v24, %s2939_s10 }
 0x2c6   : > { %1277 = vrot.lane.b32.xlu1 %v3802_v32, %s2939_s10  ;;  %1269 = vrot.lane.b32.xlu0 %v3804_v9, %s2939_s10 }
 0x2ca   : > { %1331 = vrot.lane.b32.xlu1 %v3802_v32, %s2940_s11  ;;  %1323 = vrot.lane.b32.xlu0 %v3804_v9, %s2940_s11 }
 0x2ce   : > { %1273 = vrot.lane.b32.xlu1 %v3824_v41, %s2939_s10  ;;  %1265 = vrot.lane.b32.xlu0 %v3826_v55, %s2939_s10 }
 0x2d2   : > { %1327 = vrot.lane.b32.xlu1 %v3824_v41, %s2940_s11  ;;  %1319 = vrot.lane.b32.xlu0 %v3826_v55, %s2940_s11 }
 0x2d6   : > { %1325 = vrot.lane.b32.xlu1 %v3788_v0, %s2940_s11  ;;  %1317 = vrot.lane.b32.xlu0 %v3790_v24, %s2940_s11 }
 0x2da   : > { %1394 = vperm.xlu1 %2591, %v3843_v12   ;;  %1704 = vperm.xlu0 %2593, %v3843_v12  }
 0x2de   : > { %2592 = vset.pattern.permute.xlu1 %v2942_v50  ;;  %2594 = vset.pattern.permute.xlu0 %v2941_v49 }
 0x2df   : > { %1700 = vperm.xlu1 %2592, %v3850_v26   ;;  %1390 = vperm.xlu0 %2594, %v3850_v26  }
 0x2e3   : > { %2595 = vset.pattern.permute.xlu1 %v2941_v49  ;;  %1402 = vperm.xlu0 %2594, %v3857_v36   ;;  %v1316_v49 = vld [vmem:[#allocation5 + $0x3] ss:$8 sm:$0x3] }
 0x2e4   : > { %1398 = vperm.xlu1 %2595, %v3863_v1   ;;  %v3894_v15 = vrot.slane %v1316_v49, %v3246_v40  ;;  %v3902_v52 = vrot.slane %v1316_v49, %v3244_v39 }
 0x2e7   : > { %2598 = vset.pattern.permute.xlu0 %v2943_v48 }
 0x2e8   : > { %2596 = vset.pattern.permute.xlu1 %v2942_v50  ;;  %1580 = vperm.xlu0 %2598, %v3843_v12  }
 0x2e9   : > { %1708 = vperm.xlu1 %2596, %v3863_v1  }
 0x2ec   : > { %1584 = vperm.xlu0 %2598, %v3863_v1  }
 0x2ed   : > { %1712 = vperm.xlu1 %2596, %v3857_v36  }
 0x2f0   : > { %2601 = vset.pattern.permute.xlu0 %v2944_v19 }
 0x2f1   : > { %2597 = vset.pattern.permute.xlu1 %v2943_v48  ;;  %1604 = vperm.xlu0 %2601, %v3843_v12  }
 0x2f2   : > { %1576 = vperm.xlu1 %2597, %v3850_v26  }
 0x2f5   : > { %2606 = vset.pattern.permute.xlu0 %v2945_v20 }
 0x2f6   : > { %2599 = vset.pattern.permute.xlu1 %v2945_v20  ;;  %1897 = vperm.xlu0 %2606, %v3857_v36  }
 0x2f7   : > { %1885 = vperm.xlu1 %2599, %v3850_v26  }
 0x2fa   : > { %2607 = vset.pattern.permute.xlu0 %v2946_v3 }
 0x2fb   : > { %1889 = vperm.xlu1 %2599, %v3843_v12   ;;  %1913 = vperm.xlu0 %2607, %v3843_v12  }
 0x2ff   : > { %2600 = vset.pattern.permute.xlu1 %v2944_v19  ;;  %1921 = vperm.xlu0 %2607, %v3857_v36  }
 0x300   : > { %1600 = vperm.xlu1 %2600, %v3850_v26  }
 0x303   : > { %2611 = vset.pattern.permute.xlu0 %v2947_v35 }
 0x304   : > { %2602 = vset.pattern.permute.xlu1 %v2945_v20  ;;  %2021 = vperm.xlu0 %2611, %v3863_v1  }
 0x305   : > { %1893 = vperm.xlu1 %2602, %v3863_v1  }
 0x309   : > { %2603 = vset.pattern.permute.xlu1 %v2946_v3 }
 0x30a   : > { %1909 = vperm.xlu1 %2603, %v3850_v26  }
 0x30e   : > { %2604 = vset.pattern.permute.xlu1 %v2943_v48 }
 0x30f   : > { %1588 = vperm.xlu1 %2604, %v3857_v36  }
 0x313   : > { %2605 = vset.pattern.permute.xlu1 %v2944_v19 }
 0x314   : > { %1608 = vperm.xlu1 %2605, %v3863_v1  }
 0x318   : > { %2608 = vset.pattern.permute.xlu1 %v2946_v3 }
 0x319   : > { %1917 = vperm.xlu1 %2608, %v3863_v1  }
 0x31c   : > { %v1268_v23 = vpop.permute.xlu0 %1267  ;;  %v1276_v21 = vpop.permute.xlu1 %1275 }
 0x31d   : > { %2609 = vset.pattern.permute.xlu1 %v2944_v19  ;;  %v1282_v2 = vsel %vm1279_vm3, %v1268_v23, %v1276_v21  ;;  %v1286_v42 = vsel %vm1279_vm3, %v1276_v21, %v1268_v23 }
 0x31e   : > { %1612 = vperm.xlu1 %2609, %v3857_v36   ;;  %v1304_v51 = vmul.f32 %v1296_v47, %v1282_v2  ;;  %v1303_v5 = vmul.f32 %v1292_v63, %v1286_v42 }
 0x320   : > { %v1322_v56 = vpop.permute.xlu0 %1321  ;;  %v1330_v27 = vpop.permute.xlu1 %1329  ;;  %v1312_v60 = vadd.f32 %v1304_v51, %v3752_v7  ;;  %v1311_v34 = vadd.f32 %v1303_v5, %v3750_v61 }
 0x321   : > { %v1340_v59 = vsel %vm1333_vm4, %v1330_v27, %v1322_v56  ;;  %v1336_v50 = vsel %vm1333_vm4, %v1322_v56, %v1330_v27 }
 0x322   : > { %2610 = vset.pattern.permute.xlu1 %v2947_v35  ;;  %v1358_v40 = vmul.f32 %v3894_v15, %v1340_v59  ;;  %v1357_v39 = vmul.f32 %v3902_v52, %v1336_v50 }
 0x323   : > { %2013 = vperm.xlu1 %2610, %v3850_v26  }
 0x324   : > { %v1366_v57 = vadd.f32 %v1358_v40, %v1312_v60  ;;  %v1365_v38 = vadd.f32 %v1357_v39, %v1311_v34 }
 0x326   : > { %v1374_v48 = vmul.f32 0.11111111, %v1366_v57  ;;  %v1373_v49 = vmul.f32 0.11111111, %v1365_v38 }
 0x327   : > { %2017 = vperm.xlu1 %2610, %v3843_v12  }
 0x328   : > { %v1382_v50 = vadd.f32 %v1374_v48, %v3661_v45 }
 0x32b   : > { %2025 = vperm.xlu1 %2610, %v3857_v36  }
 0x334   : > { %v1264_v58 = vpop.permute.xlu0 %1263  ;;  %v1272_v16 = vpop.permute.xlu1 %1271 }
 0x335   : > { %v1280_v35 = vsel %vm1279_vm3, %v1264_v58, %v1272_v16  ;;  %v1284_v23 = vsel %vm1279_vm3, %v1272_v16, %v1264_v58 }
 0x336   : > { %v1299_v58 = vmul.f32 %v1292_v63, %v1284_v23  ;;  %v1300_v16 = vmul.f32 %v1296_v47, %v1280_v35 }
 0x338   : > { %v1270_v6 = vpop.permute.xlu0 %1269  ;;  %v1278_v29 = vpop.permute.xlu1 %1277  ;;  %v1307_v60 = vadd.f32 %v1299_v58, %v3790_v24 }
 0x339   : > { %v1283_v33 = vsel %vm1279_vm3, %v1270_v6, %v1278_v29  ;;  %v1287_v53 = vsel %vm1279_vm3, %v1278_v29, %v1270_v6 }
 0x33a   : > { %v1305_v8 = vmul.f32 %v1292_v63, %v1287_v53  ;;  %v1306_v10 = vmul.f32 %v1296_v47, %v1283_v33 }
 0x33c   : > { %v1324_v22 = vpop.permute.xlu0 %1323  ;;  %v1332_v17 = vpop.permute.xlu1 %1331  ;;  %v1313_v11 = vadd.f32 %v1305_v8, %v3804_v9  ;;  %v1314_v43 = vadd.f32 %v1306_v10, %v3802_v32  ;;  %v1308_v8 = vadd.f32 %v1300_v16, %v3788_v0 }
 0x33d   : > { %v1337_v46 = vsel %vm1333_vm4, %v1324_v22, %v1332_v17  ;;  %v1341_v4 = vsel %vm1333_vm4, %v1332_v17, %v1324_v22 }
 0x33e   : > { %v1359_v7 = vmul.f32 %v3902_v52, %v1337_v46  ;;  %v1360_v44 = vmul.f32 %v3894_v15, %v1341_v4 }
 0x340   : > { %v1367_v19 = vadd.f32 %v1359_v7, %v1313_v11  ;;  %v1368_v20 = vadd.f32 %v1360_v44, %v1314_v43  ;;  %v1266_v3 = vpop.permute.xlu0 %1265  ;;  %v1274_v61 = vpop.permute.xlu1 %1273  ;;  %v1385_v11 = vld [vmem:[#allocation7] sm:$0xff]  ;;  %v2949_v7 = vmov 16  }
 0x341   : > { %v1281_v9 = vsel %vm1279_vm3, %v1266_v3, %v1274_v61  ;;  %v1285_v32 = vsel %vm1279_vm3, %v1274_v61, %v1266_v3 }
 0x342   : > { %v1375_v21 = vmul.f32 0.11111111, %v1367_v19  ;;  %v1376_v14 = vmul.f32 0.11111111, %v1368_v20  ;;  %v1301_v56 = vmul.f32 %v1292_v63, %v1285_v32  ;;  %v1302_v27 = vmul.f32 %v1296_v47, %v1281_v9 }
 0x344   : > { %v1383_v2 = vadd.f32 %v1375_v21, %v3675_v18  ;;  %v1320_v59 = vpop.permute.xlu0 %1319  ;;  %v1328_v42 = vpop.permute.xlu1 %1327  ;;  %v1384_v51 = vadd.f32 %v1376_v14, %v3681_v54  ;;  %v1309_v29 = vadd.f32 %v1301_v56, %v3826_v55  ;;  %v1310_v5 = vadd.f32 %v1302_v27, %v3824_v41 }
 0x345   : > { %v1335_v40 = vsel %vm1333_vm4, %v1320_v59, %v1328_v42  ;;  %v1339_v6 = vsel %vm1333_vm4, %v1328_v42, %v1320_v59  ;;  %v1381_v54 = vadd.f32 %v1373_v49, %v3657_v62 }
 0x346   : > { %v1355_v18 = vmul.f32 %v3902_v52, %v1335_v40  ;;  %v1356_v33 = vmul.f32 %v3894_v15, %v1339_v6  ;;  %1441 = vmatprep.subr.mxu0 %v1384_v51 }
 0x347   : > { %1442 = vmatpush1.msra.mxu0 %v1383_v2 }
 0x348   : > { %v1363_v45 = vadd.f32 %v1355_v18, %v1309_v29  ;;  %v1364_v47 = vadd.f32 %v1356_v33, %v1310_v5  ;;  %v1318_v63 = vpop.permute.xlu0 %1317  ;;  %1443 = vmatprep.subr.mxu0 %v1382_v50  ;;  %v1326_v53 = vpop.permute.xlu1 %1325 }
 0x349   : > { %v1334_v41 = vsel %vm1333_vm4, %v1318_v63, %v1326_v53  ;;  %v1338_v55 = vsel %vm1333_vm4, %v1326_v53, %v1318_v63  ;;  %1444 = vmatpush1.msra.mxu0 %v1381_v54 }
 0x34a   : > { %v1371_v10 = vmul.f32 0.11111111, %v1363_v45  ;;  %v1372_v39 = vmul.f32 0.11111111, %v1364_v47  ;;  %v1353_v62 = vmul.f32 %v3902_v52, %v1334_v41  ;;  %v1354_v57 = vmul.f32 %v3894_v15, %v1338_v55 }
 0x34b   : > { %v2948_v15 = vmov 15  }
 0x34c   : > { %v1379_v22 = vadd.f32 %v1371_v10, %v3687_v25  ;;  %v1361_v17 = vadd.f32 %v1353_v62, %v1307_v60  ;;  %v1362_v34 = vadd.f32 %v1354_v57, %v1308_v8  ;;  %v1380_v24 = vadd.f32 %v1372_v39, %v3693_v13  ;;  %v1386_v25 = vld [vmem:[#allocation7 + $0x8] sm:$0xff]  ;;  %v1387_v13 = vld [vmem:[#allocation7 + $0x10] sm:$0xff]  ;;  %2612 = vset.pattern.permute.xlu1 %v2948_v15 }
 0x34d   : > { %2613 = vset.pattern.permute.xlu0 %v2948_v15  ;;  %2117 = vperm.xlu1 %2612, %v3857_v36  }
 0x34e   : > { %v1369_v0 = vmul.f32 0.11111111, %v1361_v17  ;;  %v1370_v46 = vmul.f32 0.11111111, %v1362_v34  ;;  %1445 = vmatprep.subr.mxu0 %v1380_v24  ;;  %2113 = vperm.xlu0 %2613, %v3863_v1  }
 0x34f   : > { %1446 = vmatpush1.msra.mxu0 %v1379_v22 }
 0x350   : > { %v1377_v37 = vadd.f32 %v1369_v0, %v3667_v31  ;;  %v1378_v4 = vadd.f32 %v1370_v46, %v3673_v30  ;;  %v1388_v31 = vld [vmem:[#allocation7 + $0x18] sm:$0xff]  ;;  %v1793_v30 = vpop.f32.mrf.mxu1 }
 0x351   : > { %2614 = vset.pattern.permute.xlu1 %v2949_v7 }
 0x352   : > { %1447 = vmatprep.subr.mxu0 %v1378_v4  ;;  %v1795_v43 = vpop.f32.mrf.mxu1  ;;  %2616 = vset.pattern.permute.xlu0 %v2949_v7 }
 0x353   : > { %1448 = vmatpush1.msra.mxu0 %v1377_v37  ;;  %2141 = vperm.xlu1 %2614, %v3857_v36  }
 0x354   : > { %2436 = vmatmul.mubr.msk.f32.vlgmr.msra.gmra.mxu0 %vm965_vm2, %v1385_v11  ;;  %2137 = vperm.xlu0 %2616, %v3863_v1   ;;  %v1799_v44 = vpop.f32.mrf.mxu1 }
 0x355   : > { %1487 = vmatprep.mubr.f32.mxu0 %v2938_v28  ;;  %v3964_v52 = vpop.permute.xlu1 %1394  ;;  %v1705_v3 = vpop.permute.xlu0 %1704 }
 0x356   : > { %v1801_v48 = vpop.f32.mrf.mxu1  ;;  %v1800_v9 = vadd.f32 %v1799_v44, %v1705_v3 }
 0x357   : > { %2615 = vset.pattern.permute.xlu1 %v2948_v15  ;;  %v1802_v21 = vadd.f32 %v1801_v48, %v1705_v3 }
 0x358   : > { %2437 = vmatmul.mubr.msk.f32.gmra.mxu0 %vm965_vm2, %v1386_v25  ;;  %2129 = vperm.xlu0 %2616, %v3850_v26   ;;  %v1805_v20 = vpop.f32.mrf.mxu1 }
 0x359   : > { %1493 = vmatprep.mubr.f32.mxu0 %v2938_v28  ;;  %2109 = vperm.xlu1 %2615, %v3843_v12  }
 0x35a   : > { %v1701_v38 = vpop.permute.xlu1 %1700  ;;  %v1807_v61 = vpop.f32.mrf.mxu1 }
 0x35b   : > { %v1794_v23 = vadd.f32 %v1793_v30, %v1701_v38  ;;  %v1796_v32 = vadd.f32 %v1795_v43, %v1701_v38 }
 0x35c   : > { %2438 = vmatmul.mubr.msk.f32.gmra.mxu0 %vm965_vm2, %v1387_v13  ;;  %v1811_v14 = vpop.f32.mrf.mxu1 }
 0x35d   : > { %1499 = vmatprep.mubr.f32.mxu0 %v2938_v28  ;;  %2105 = vperm.xlu1 %2615, %v3850_v26   ;;  %v1816_v56 = vadd.f32 %v1800_v9, %v1794_v23  ;;  %v1825_v49 = vadd.f32 %v1802_v21, %v1796_v32 }
 0x35e   : > { %v1813_v42 = vpop.f32.mrf.mxu1 }
 0x35f   : > { %v3970_v19 = vpop.permute.xlu1 %1398 }
 0x360   : > { %2439 = vmatmul.mubr.msk.f32.gmra.mxu0 %vm965_vm2, %v1388_v31 }
 0x361   : > { %2232 = vmatprep.mubr.f32.mxu0 %v2938_v28  ;;  %2617 = vset.pattern.permute.xlu1 %v2949_v7 }
 0x362   : > { %2133 = vperm.xlu1 %2617, %v3843_v12  }
 0x364   : > { %v1709_v35 = vpop.permute.xlu1 %1708 }
 0x365   : > { %v1806_v27 = vadd.f32 %v1805_v20, %v1709_v35  ;;  %v1808_v2 = vadd.f32 %v1807_v61, %v1709_v35 }
 0x367   : > { %v1817_v51 = vadd.f32 %v1816_v56, %v1806_v27  ;;  %v1826_v58 = vadd.f32 %v1825_v49, %v1808_v2 }
 0x368   : > { %v1713_v59 = vpop.permute.xlu1 %1712 }
 0x369   : > { %v1812_v50 = vadd.f32 %v1811_v14, %v1713_v59  ;;  %v1814_v16 = vadd.f32 %v1813_v42, %v1713_v59  ;;  %v1391_v59 = vpop.permute.xlu0 %1390 }
 0x36b   : > { %v1818_v40 = vadd.f32 %v1817_v51, %v1812_v50  ;;  %v1827_v6 = vadd.f32 %v1826_v58, %v1814_v16 }
 0x36d   : > { %v1819_v29 = vrot.slane %v1818_v40, 4  ;;  %v1828_v5 = vrot.slane %v1827_v6, 4 }
 0x36f   : > { %v1820_v18 = vadd.f32 %v1819_v29, %v1818_v40  ;;  %v1829_v33 = vadd.f32 %v1828_v5, %v1827_v6 }
 0x371   : > { %v1821_v54 = vrot.slane %v1820_v18, 2  ;;  %v1830_v45 = vrot.slane %v1829_v33, 2 }
 0x373   : > { %v1822_v47 = vadd.f32 %v1821_v54, %v1820_v18  ;;  %v1831_v63 = vadd.f32 %v1830_v45, %v1829_v33 }
 0x375   : > { %v1823_v53 = vrot.slane %v1822_v47, 1  ;;  %v1832_v60 = vrot.slane %v1831_v63, 1 }
 0x377   : > { %v1824_v8 = vadd.f32 %v1823_v53, %v1822_v47  ;;  %v1833_v41 = vadd.f32 %v1832_v60, %v1831_v63  ;;  %v1403_v63 = vpop.permute.xlu0 %1402 }
 0x379   : > { %v1834_v55 = vmul.f32 0.03125, %v1824_v8  ;;  %v1835_v10 = vmul.f32 0.03125, %v1833_v41 }
 0x37b   : > { %v3974_v39 = vsub.f32 %v1800_v9, %v1834_v55  ;;  %v3976_v62 = vsub.f32 %v1794_v23, %v1834_v55  ;;  %v3978_v57 = vsub.f32 %v1802_v21, %v1835_v10  ;;  %v3980_v22 = vsub.f32 %v1796_v32, %v1835_v10  ;;  %v4006_v23 = vpop.permute.xlu1 %1576 }
 0x37c   : > { %v3982_v17 = vsub.f32 %v1806_v27, %v1834_v55  ;;  %v3988_v0 = vsub.f32 %v1808_v2, %v1835_v10  ;;  %v3994_v4 = vsub.f32 %v1812_v50, %v1834_v55  ;;  %v3998_v13 = vsub.f32 %v1814_v16, %v1835_v10 }
 0x37d   : > { %v1844_v34 = vmul.f32 %v3976_v62, %v3976_v62  ;;  %v1846_v24 = vmul.f32 %v3974_v39, %v3974_v39  ;;  %v1845_v46 = vmul.f32 %v3980_v22, %v3980_v22  ;;  %v1847_v37 = vmul.f32 %v3978_v57, %v3978_v57 }
 0x37e   : > { %v1848_v11 = vmul.f32 %v3982_v17, %v3982_v17  ;;  %v1849_v31 = vmul.f32 %v3988_v0, %v3988_v0  ;;  %v1850_v15 = vmul.f32 %v3994_v4, %v3994_v4  ;;  %v1851_v7 = vmul.f32 %v3998_v13, %v3998_v13 }
 0x37f   : > { %v1852_v25 = vadd.f32 %v1846_v24, %v1844_v34  ;;  %v1861_v30 = vadd.f32 %v1847_v37, %v1845_v46  ;;  %v4008_v2 = vpop.permute.xlu1 %1885 }
 0x381   : > { %v1853_v43 = vadd.f32 %v1852_v25, %v1848_v11  ;;  %v1862_v44 = vadd.f32 %v1861_v30, %v1849_v31 }
 0x383   : > { %v1854_v38 = vadd.f32 %v1853_v43, %v1850_v15  ;;  %v1863_v48 = vadd.f32 %v1862_v44, %v1851_v7  ;;  %v4013_v18 = vpop.permute.xlu1 %1889  ;;  %v4018_v7 = vpop.permute.xlu0 %1580 }
 0x385   : > { %v1855_v20 = vrot.slane %v1854_v38, 4  ;;  %v1864_v3 = vrot.slane %v1863_v48, 4 }
 0x387   : > { %v1856_v61 = vadd.f32 %v1855_v20, %v1854_v38  ;;  %v1865_v35 = vadd.f32 %v1864_v3, %v1863_v48  ;;  %v4016_v11 = vpop.permute.xlu1 %1600 }
 0x389   : > { %v1857_v9 = vrot.slane %v1856_v61, 2  ;;  %v1866_v21 = vrot.slane %v1865_v35, 2 }
 0x38b   : > { %v1858_v56 = vadd.f32 %v1857_v9, %v1856_v61  ;;  %v1867_v49 = vadd.f32 %v1866_v21, %v1865_v35  ;;  %v1894_v48 = vpop.permute.xlu1 %1893  ;;  %v4020_v9 = vpop.permute.xlu0 %1584 }
 0x38d   : > { %v1859_v50 = vrot.slane %v1858_v56, 1  ;;  %v1868_v16 = vrot.slane %v1867_v49, 1 }
 0x38f   : > { %v1860_v47 = vadd.f32 %v1859_v50, %v1858_v56  ;;  %v1869_v60 = vadd.f32 %v1868_v16, %v1867_v49 }
 0x391   : > { %v1870_v46 = vmul.f32 0.03125, %v1860_v47  ;;  %v1871_v37 = vmul.f32 0.03125, %v1869_v60 }
 0x393   : > { %v1873_v43 = vadd.f32 1e-05, %v1871_v37 }
 0x414   : > { %v1483_v32 = vpop.f32.mrf.mxu0 }
 0x415   : > { %v1484_v40 = vadd.f32 %v1483_v32, %v1391_v59 }
 0x416   : > { %v1485_v14 = vpop.f32.mrf.mxu0 }
 0x417   : > { %v1486_v33 = vadd.f32 %v1485_v14, %v1391_v59  ;;  %v1910_v14 = vpop.permute.xlu1 %1909 }
 0x418   : > { %v1489_v27 = vpop.f32.mrf.mxu0 }
 0x419   : > { %v1490_v51 = vadd.f32 %v1489_v27, %v3964_v52 }
 0x41a   : > { %v1491_v42 = vpop.f32.mrf.mxu0 }
 0x41b   : > { %v1492_v6 = vadd.f32 %v1491_v42, %v3964_v52  ;;  %v1506_v54 = vadd.f32 %v1490_v51, %v1484_v40 }
 0x41c   : > { %v1495_v58 = vpop.f32.mrf.mxu0 }
 0x41d   : > { %v1496_v29 = vadd.f32 %v1495_v58, %v3970_v19  ;;  %v1515_v8 = vadd.f32 %v1492_v6, %v1486_v33  ;;  %v4028_v58 = vpop.permute.xlu0 %1604 }
 0x41e   : > { %v1497_v5 = vpop.f32.mrf.mxu0 }
 0x41f   : > { %v1498_v45 = vadd.f32 %v1497_v5, %v3970_v19  ;;  %v1507_v41 = vadd.f32 %v1506_v54, %v1496_v29  ;;  %v1872_v19 = vadd.f32 1e-05, %v1870_v46 }
 0x420   : > { %v1501_v53 = vpop.f32.mrf.mxu0 }
 0x421   : > { %v1502_v55 = vadd.f32 %v1501_v53, %v1403_v63  ;;  %v1516_v34 = vadd.f32 %v1515_v8, %v1498_v45  ;;  %2684 = vrsqrt.f32 %v1872_v19 }
 0x422   : > { %v1503_v10 = vpop.f32.mrf.mxu0  ;;  %2686 = vrsqrt.f32 %v1873_v43 }
 0x423   : > { %v1508_v24 = vadd.f32 %v1507_v41, %v1502_v55  ;;  %v1504_v52 = vadd.f32 %v1503_v10, %v1403_v63 }
 0x425   : > { %v1509_v25 = vrot.slane %v1508_v24, 4  ;;  %v1517_v31 = vadd.f32 %v1516_v34, %v1504_v52 }
 0x427   : > { %v1510_v30 = vadd.f32 %v1509_v25, %v1508_v24  ;;  %v1518_v15 = vrot.slane %v1517_v31, 4  ;;  %v1898_v24 = vpop.permute.xlu0 %1897 }
 0x429   : > { %v1511_v44 = vrot.slane %v1510_v30, 2  ;;  %v1519_v38 = vadd.f32 %v1518_v15, %v1517_v31 }
 0x42b   : > { %v1512_v20 = vadd.f32 %v1511_v44, %v1510_v30  ;;  %v1520_v3 = vrot.slane %v1519_v38, 2 }
 0x42d   : > { %v1513_v61 = vrot.slane %v1512_v20, 1  ;;  %v1521_v35 = vadd.f32 %v1520_v3, %v1519_v38 }
 0x42f   : > { %v1514_v32 = vadd.f32 %v1513_v61, %v1512_v20  ;;  %v1522_v21 = vrot.slane %v1521_v35, 1 }
 0x431   : > { %v1525_v56 = vmul.f32 0.03125, %v1514_v32  ;;  %v1523_v27 = vadd.f32 %v1522_v21, %v1521_v35  ;;  %v1914_v32 = vpop.permute.xlu0 %1913 }
 0x433   : > { %v4022_v49 = vsub.f32 %v1484_v40, %v1525_v56  ;;  %v4024_v59 = vsub.f32 %v1490_v51, %v1525_v56  ;;  %v4026_v42 = vsub.f32 %v1496_v29, %v1525_v56  ;;  %v1526_v50 = vmul.f32 0.03125, %v1523_v27  ;;  %v4042_v51 = vpop.permute.xlu1 %1588 }
 0x434   : > { %v4030_v16 = vsub.f32 %v1502_v55, %v1525_v56 }
 0x435   : > { %v1535_v5 = vmul.f32 %v4022_v49, %v4022_v49  ;;  %v1537_v54 = vmul.f32 %v4024_v59, %v4024_v59  ;;  %v4036_v47 = vsub.f32 %v1486_v33, %v1526_v50  ;;  %v4038_v63 = vsub.f32 %v1492_v6, %v1526_v50  ;;  %v2685_v33 = vpop.eup %2684 }
 0x436   : > { %v4040_v40 = vsub.f32 %v1498_v45, %v1526_v50  ;;  %v1539_v29 = vmul.f32 %v4026_v42, %v4026_v42  ;;  %v4046_v60 = vsub.f32 %v1504_v52, %v1526_v50  ;;  %v1541_v6 = vmul.f32 %v4030_v16, %v4030_v16  ;;  %v2687_v55 = vpop.eup %2686 }
 0x437   : > { %v1543_v53 = vadd.f32 %v1537_v54, %v1535_v5  ;;  %v1536_v8 = vmul.f32 %v4036_v47, %v4036_v47  ;;  %v1538_v41 = vmul.f32 %v4038_v63, %v4038_v63  ;;  %v1876_v52 = vmul.f32 %v2685_v33, %v3976_v62  ;;  %v4060_v30 = vpop.permute.xlu1 %1608 }
 0x438   : > { %v1540_v10 = vmul.f32 %v4040_v40, %v4040_v40  ;;  %v1542_v37 = vmul.f32 %v4046_v60, %v4046_v60  ;;  %v1877_v31 = vmul.f32 %v2687_v55, %v3980_v22  ;;  %v1878_v19 = vmul.f32 %v2685_v33, %v3974_v39 }
 0x439   : > { %v1544_v45 = vadd.f32 %v1543_v53, %v1539_v29  ;;  %v1552_v34 = vadd.f32 %v1538_v41, %v1536_v8  ;;  %v1879_v43 = vmul.f32 %v2687_v55, %v3978_v57  ;;  %v1880_v44 = vmul.f32 %v2685_v33, %v3982_v17 }
 0x43a   : > { %v1881_v20 = vmul.f32 %v2687_v55, %v3988_v0  ;;  %v1900_v62 = vmul.f32 %v4008_v2, %v1876_v52  ;;  %v1882_v61 = vmul.f32 %v2685_v33, %v3994_v4  ;;  %v1901_v22 = vmul.f32 %v4008_v2, %v1877_v31  ;;  %v1922_v2 = vpop.permute.xlu0 %1921 }
 0x43b   : > { %v1545_v46 = vadd.f32 %v1544_v45, %v1541_v6  ;;  %v1553_v25 = vadd.f32 %v1552_v34, %v1540_v10  ;;  %v1902_v56 = vmul.f32 %v4013_v18, %v1878_v19  ;;  %v1903_v39 = vmul.f32 %v4013_v18, %v1879_v43  ;;  %v1918_v50 = vpop.permute.xlu1 %1917 }
 0x43c   : > { %v1904_v57 = vmul.f32 %v1894_v48, %v1880_v44  ;;  %v1905_v17 = vmul.f32 %v1894_v48, %v1881_v20  ;;  %v4071_v0 = vadd.f32 %v1910_v14, %v1900_v62  ;;  %v1883_v54 = vmul.f32 %v2687_v55, %v3998_v13 }
 0x43d   : > { %v1546_v15 = vrot.slane %v1545_v46, 4  ;;  %v1554_v38 = vadd.f32 %v1553_v25, %v1542_v37  ;;  %v1906_v29 = vmul.f32 %v1898_v24, %v1882_v61  ;;  %v4074_v53 = vadd.f32 %v1910_v14, %v1901_v22 }
 0x43e   : > { %v4076_v41 = vadd.f32 %v1914_v32, %v1902_v56  ;;  %v4078_v33 = vadd.f32 %v1914_v32, %v1903_v39  ;;  %v4080_v18 = vadd.f32 %v1918_v50, %v1904_v57  ;;  %v4082_v48 = vadd.f32 %v1918_v50, %v1905_v17 }
 0x43f   : > { %v1547_v3 = vadd.f32 %v1546_v15, %v1545_v46  ;;  %v1555_v35 = vrot.slane %v1554_v38, 4  ;;  %v1940_v10 = vmul.f32 %v4071_v0, %v4071_v0  ;;  %v1907_v13 = vmul.f32 %v1898_v24, %v1883_v54 }
 0x440   : > { %v4086_v55 = vadd.f32 %v1922_v2, %v1906_v29  ;;  %v1941_v34 = vmul.f32 %v4074_v53, %v4074_v53  ;;  %v1942_v52 = vmul.f32 %v4076_v41, %v4076_v41  ;;  %v1943_v37 = vmul.f32 %v4078_v33, %v4078_v33 }
 0x441   : > { %v1548_v21 = vrot.slane %v1547_v3, 2  ;;  %v1556_v27 = vadd.f32 %v1555_v35, %v1554_v38  ;;  %v1944_v25 = vmul.f32 %v4080_v18, %v4080_v18  ;;  %v1945_v24 = vmul.f32 %v4082_v48, %v4082_v48 }
 0x442   : > { %v1948_v19 = vmul.f32 %v1940_v10, %v4071_v0  ;;  %v4099_v43 = vadd.f32 %v1922_v2, %v1907_v13  ;;  %v1946_v44 = vmul.f32 %v4086_v55, %v4086_v55  ;;  %v1949_v20 = vmul.f32 %v1941_v34, %v4074_v53 }
 0x443   : > { %v1549_v5 = vadd.f32 %v1548_v21, %v1547_v3  ;;  %v1557_v4 = vrot.slane %v1556_v27, 2  ;;  %v1950_v3 = vmul.f32 %v1942_v52, %v4076_v41  ;;  %v1951_v62 = vmul.f32 %v1943_v37, %v4078_v33 }
 0x444   : > { %v1952_v61 = vmul.f32 %v1944_v25, %v4080_v18  ;;  %v1953_v22 = vmul.f32 %v1945_v24, %v4082_v48  ;;  %v1956_v32 = vmul.f32 0.044715, %v1948_v19  ;;  %v1947_v21 = vmul.f32 %v4099_v43, %v4099_v43 }
 0x445   : > { %v1550_v8 = vrot.slane %v1549_v5, 1  ;;  %v1558_v6 = vadd.f32 %v1557_v4, %v1556_v27  ;;  %v1954_v56 = vmul.f32 %v1946_v44, %v4086_v55  ;;  %v1957_v39 = vmul.f32 0.044715, %v1949_v20 }
 0x446   : > { %v1958_v57 = vmul.f32 0.044715, %v1950_v3  ;;  %v1959_v27 = vmul.f32 0.044715, %v1951_v62  ;;  %v1960_v17 = vmul.f32 0.044715, %v1952_v61  ;;  %v1955_v54 = vmul.f32 %v1947_v21, %v4099_v43  ;;  %v1613_v3 = vpop.permute.xlu1 %1612 }
 0x447   : > { %v1551_v45 = vadd.f32 %v1550_v8, %v1549_v5  ;;  %v1559_v14 = vrot.slane %v1558_v6, 1  ;;  %v1961_v50 = vmul.f32 0.044715, %v1953_v22  ;;  %v1964_v5 = vadd.f32 %v1956_v32, %v4071_v0 }
 0x448   : > { %v1962_v29 = vmul.f32 0.044715, %v1954_v56  ;;  %v1965_v4 = vadd.f32 %v1957_v39, %v4074_v53  ;;  %v1966_v2 = vadd.f32 %v1958_v57, %v4076_v41  ;;  %v1967_v8 = vadd.f32 %v1959_v27, %v4078_v33 }
 0x449   : > { %v1561_v46 = vmul.f32 0.03125, %v1551_v45  ;;  %v1560_v31 = vadd.f32 %v1559_v14, %v1558_v6  ;;  %v1968_v6 = vadd.f32 %v1960_v17, %v4080_v18  ;;  %v1969_v45 = vadd.f32 %v1961_v50, %v4082_v48 }
 0x44a   : > { %v1972_v10 = vmul.f32 0.7978846, %v1964_v5  ;;  %v1963_v13 = vmul.f32 0.044715, %v1955_v54  ;;  %v1970_v14 = vadd.f32 %v1962_v29, %v4086_v55  ;;  %v1973_v34 = vmul.f32 0.7978846, %v1965_v4 }
 0x44b   : > { %v1563_v15 = vadd.f32 1e-05, %v1561_v46  ;;  %v1562_v38 = vmul.f32 0.03125, %v1560_v31  ;;  %v1974_v52 = vmul.f32 0.7978846, %v1966_v2 }
 0x44c   : > { %v1975_v37 = vmul.f32 0.7978846, %v1967_v8  ;;  %v1976_v25 = vmul.f32 0.7978846, %v1968_v6  ;;  %v1977_v31 = vmul.f32 0.7978846, %v1969_v45  ;;  %v1971_v44 = vadd.f32 %v1963_v13, %v4099_v43 }
 0x44d   : > { %2688 = vrsqrt.f32 %v1563_v15  ;;  %v1564_v35 = vadd.f32 1e-05, %v1562_v38  ;;  %v1978_v38 = vmul.f32 0.7978846, %v1970_v14 }
 0x44f   : > { %2690 = vrsqrt.f32 %v1564_v35 }
 0x450   : > { %2692 = vtanh.f32 %v1972_v10 }
 0x451   : > { %2694 = vtanh.f32 %v1973_v34 }
 0x452   : > { %2696 = vtanh.f32 %v1974_v52 }
 0x453   : > { %2698 = vtanh.f32 %v1975_v37 }
 0x454   : > { %2700 = vtanh.f32 %v1976_v25 }
 0x455   : > { %2702 = vtanh.f32 %v1977_v31 }
 0x456   : > { %2704 = vtanh.f32 %v1978_v38 }
 0x45a   : > { %v2689_v46 = vpop.eup %2688 }
 0x45b   : > { %v1567_v24 = vmul.f32 %v2689_v46, %v4022_v49  ;;  %v1569_v15 = vmul.f32 %v2689_v46, %v4024_v59  ;;  %v1573_v19 = vmul.f32 %v2689_v46, %v4030_v16  ;;  %v1571_v20 = vmul.f32 %v2689_v46, %v4026_v42 }
 0x45c   : > { %v2691_v62 = vpop.eup %2690 }
 0x45d   : > { %v1597_v61 = vmul.f32 %v4042_v51, %v1573_v19  ;;  %v1591_v35 = vmul.f32 %v4006_v23, %v1567_v24  ;;  %v1593_v22 = vmul.f32 %v4018_v7, %v1569_v15  ;;  %v1568_v49 = vmul.f32 %v2691_v62, %v4036_v47  ;;  %v2693_v31 = vpop.eup %2692 }
 0x45e   : > { %v1570_v59 = vmul.f32 %v2691_v62, %v4038_v63  ;;  %v1572_v16 = vmul.f32 %v2691_v62, %v4040_v40  ;;  %v1574_v32 = vmul.f32 %v2691_v62, %v4046_v60  ;;  %v1595_v39 = vmul.f32 %v4020_v9, %v1571_v20 }
 0x45f   : > { %v4131_v21 = vadd.f32 %v1613_v3, %v1597_v61  ;;  %v4134_v42 = vadd.f32 %v4016_v11, %v1591_v35  ;;  %v4137_v56 = vadd.f32 %v4028_v58, %v1593_v22  ;;  %v1592_v47 = vmul.f32 %v4006_v23, %v1568_v49 }
 0x460   : > { %v1598_v57 = vmul.f32 %v4042_v51, %v1574_v32  ;;  %v1594_v63 = vmul.f32 %v4018_v7, %v1570_v59  ;;  %v1596_v40 = vmul.f32 %v4020_v9, %v1572_v16  ;;  %v1979_v7 = vmul.f32 0.7978846, %v1971_v44  ;;  %v2695_v44 = vpop.eup %2694 }
 0x461   : > { %v1637_v60 = vmul.f32 %v4131_v21, %v4131_v21  ;;  %v1631_v27 = vmul.f32 %v4134_v42, %v4134_v42  ;;  %v4151_v50 = vadd.f32 %v4016_v11, %v1592_v47  ;;  %v1633_v23 = vmul.f32 %v4137_v56, %v4137_v56  ;;  %v2697_v22 = vpop.eup %2696 }
 0x462   : > { %v4148_v17 = vadd.f32 %v1613_v3, %v1598_v57  ;;  %v4154_v51 = vadd.f32 %v4028_v58, %v1594_v63  ;;  %v4165_v29 = vadd.f32 %v4060_v30, %v1595_v39  ;;  %v4173_v10 = vadd.f32 %v4060_v30, %v1596_v40  ;;  %v2699_v47 = vpop.eup %2698 }
 0x463   : > { %v1645_v9 = vmul.f32 %v1637_v60, %v4131_v21  ;;  %v1639_v5 = vmul.f32 %v1631_v27, %v4134_v42  ;;  %v1632_v11 = vmul.f32 %v4151_v50, %v4151_v50  ;;  %v1641_v8 = vmul.f32 %v1633_v23, %v4137_v56  ;;  %v2701_v60 = vpop.eup %2700 }
 0x464   : > { %v1638_v54 = vmul.f32 %v4148_v17, %v4148_v17  ;;  %v1634_v2 = vmul.f32 %v4154_v51, %v4154_v51  ;;  %2706 = vtanh.f32 %v1979_v7  ;;  %v1635_v25 = vmul.f32 %v4165_v29, %v4165_v29  ;;  %v2703_v23 = vpop.eup %2702 }
 0x465   : > { %v1653_v58 = vmul.f32 0.044715, %v1645_v9  ;;  %v1647_v4 = vmul.f32 0.044715, %v1639_v5  ;;  %v1640_v45 = vmul.f32 %v1632_v11, %v4151_v50  ;;  %v1649_v46 = vmul.f32 0.044715, %v1641_v8  ;;  %v2705_v5 = vpop.eup %2704 }
 0x466   : > { %v1646_v6 = vmul.f32 %v1638_v54, %v4148_v17  ;;  %v1642_v34 = vmul.f32 %v1634_v2, %v4154_v51  ;;  %v1636_v3 = vmul.f32 %v4173_v10, %v4173_v10  ;;  %v1643_v62 = vmul.f32 %v1635_v25, %v4165_v29 }
 0x467   : > { %v1661_v13 = vadd.f32 %v1653_v58, %v4131_v21  ;;  %v1655_v14 = vadd.f32 %v1647_v4, %v4134_v42  ;;  %v1648_v37 = vmul.f32 0.044715, %v1640_v45  ;;  %v1657_v30 = vadd.f32 %v1649_v46, %v4137_v56 }
 0x468   : > { %v1654_v52 = vmul.f32 0.044715, %v1646_v6  ;;  %v1650_v19 = vmul.f32 0.044715, %v1642_v34  ;;  %v1644_v16 = vmul.f32 %v1636_v3, %v4173_v10  ;;  %v2950_v32 = vmov 17  }
 0x469   : > { %v1669_v24 = vmul.f32 0.7978846, %v1661_v13  ;;  %v1663_v15 = vmul.f32 0.7978846, %v1655_v14  ;;  %v1656_v20 = vadd.f32 %v1648_v37, %v4151_v50  ;;  %v1665_v35 = vmul.f32 0.7978846, %v1657_v30  ;;  %2618 = vset.pattern.permute.xlu1 %v2950_v32  ;;  %2619 = vset.pattern.permute.xlu0 %v2950_v32  ;;  %v2014_v37 = vpop.permute.xlu1 %2013 }
 0x46a   : > { %v1662_v38 = vadd.f32 %v1654_v52, %v4148_v17  ;;  %v1658_v61 = vadd.f32 %v1650_v19, %v4154_v51  ;;  %v1651_v57 = vmul.f32 0.044715, %v1643_v62  ;;  %2266 = vperm.xlu1 %2618, %v3850_v26   ;;  %2270 = vperm.xlu0 %2619, %v3843_v12   ;;  %v1652_v63 = vmul.f32 0.044715, %v1644_v16 }
 0x46b   : > { %2708 = vtanh.f32 %v1669_v24  ;;  %v1664_v59 = vmul.f32 0.7978846, %v1656_v20  ;;  %v1932_v12 = vmul.f32 0.5, %v4071_v0  ;;  %v1933_v54 = vmul.f32 0.5, %v4074_v53 }
 0x46c   : > { %v1670_v49 = vmul.f32 0.7978846, %v1662_v38  ;;  %2710 = vtanh.f32 %v1663_v15  ;;  %v1666_v39 = vmul.f32 0.7978846, %v1658_v61  ;;  %v1659_v40 = vadd.f32 %v1651_v57, %v4165_v29 }
 0x46d   : > { %2712 = vtanh.f32 %v1665_v35  ;;  %v1660_v27 = vadd.f32 %v1652_v63, %v4173_v10  ;;  %v1988_v11 = vadd.f32 1.0, %v2693_v31  ;;  %v1989_v58 = vadd.f32 1.0, %v2695_v44 }
 0x46e   : > { %2714 = vtanh.f32 %v1670_v49  ;;  %v1667_v7 = vmul.f32 0.7978846, %v1659_v40  ;;  %2274 = vperm.xlu1 %2618, %v3863_v1   ;;  %v1934_v4 = vmul.f32 0.5, %v4076_v41  ;;  %v1990_v2 = vadd.f32 1.0, %v2697_v22 }
 0x46f   : > { %2716 = vtanh.f32 %v1664_v59  ;;  %v1668_v9 = vmul.f32 0.7978846, %v1660_v27  ;;  %v1935_v6 = vmul.f32 0.5, %v4078_v33  ;;  %v1991_v1 = vadd.f32 1.0, %v2699_v47 }
 0x470   : > { %2718 = vtanh.f32 %v1666_v39  ;;  %v1938_v13 = vmul.f32 0.5, %v4086_v55  ;;  %v1939_v14 = vmul.f32 0.5, %v4099_v43  ;;  %v1937_v0 = vmul.f32 0.5, %v4082_v48  ;;  %v2018_v39 = vpop.permute.xlu1 %2017 }
 0x471   : > { %2720 = vtanh.f32 %v1667_v7  ;;  %v2707_v26 = vpop.eup %2706  ;;  %v1623_v53 = vmul.f32 0.5, %v4134_v42  ;;  %v1996_v52 = vmul.f32 %v1988_v11, %v1932_v12  ;;  %v1997_v41 = vmul.f32 %v1989_v58, %v1933_v54 }
 0x472   : > { %2722 = vtanh.f32 %v1668_v9  ;;  %2278 = vperm.xlu1 %2618, %v3857_v36   ;;  %v1936_v36 = vmul.f32 0.5, %v4080_v18  ;;  %v1625_v33 = vmul.f32 0.5, %v4137_v56  ;;  %v1998_v24 = vmul.f32 %v1990_v2, %v1934_v4 }
 0x473   : > { %v1992_v15 = vadd.f32 1.0, %v2701_v60  ;;  %v1999_v43 = vmul.f32 %v1991_v1, %v1935_v6  ;;  %v1993_v18 = vadd.f32 1.0, %v2703_v23  ;;  %v1624_v48 = vmul.f32 0.5, %v4151_v50 }
 0x474   : > { %v1629_v20 = vmul.f32 0.5, %v4131_v21  ;;  %v1626_v62 = vmul.f32 0.5, %v4154_v51  ;;  %v1994_v49 = vadd.f32 1.0, %v2705_v5  ;;  %v1995_v59 = vadd.f32 1.0, %v2707_v26 }
 0x475   : > { %v1630_v57 = vmul.f32 0.5, %v4148_v17  ;;  %v1627_v50 = vmul.f32 0.5, %v4165_v29  ;;  %v1628_v7 = vmul.f32 0.5, %v4173_v10  ;;  %v2000_v54 = vmul.f32 %v1992_v15, %v1936_v36  ;;  %v2022_v17 = vpop.permute.xlu0 %2021 }
 0x476   : > { %v2002_v26 = vmul.f32 %v1994_v49, %v1938_v13  ;;  %v2003_v58 = vmul.f32 %v1995_v59, %v1939_v14  ;;  %v2001_v2 = vmul.f32 %v1993_v18, %v1937_v0 }
 0x478   : > { %v2709_v8 = vpop.eup %2708 }
 0x479   : > { %v2711_v45 = vpop.eup %2710  ;;  %v1685_v30 = vadd.f32 1.0, %v2709_v8 }
 0x47a   : > { %v2713_v34 = vpop.eup %2712  ;;  %v1679_v46 = vadd.f32 1.0, %v2711_v45 }
 0x47b   : > { %v2715_v25 = vpop.eup %2714  ;;  %v1681_v31 = vadd.f32 1.0, %v2713_v34  ;;  %v1693_v47 = vmul.f32 %v1685_v30, %v1629_v20 }
 0x47c   : > { %v2717_v55 = vpop.eup %2716  ;;  %v1687_v19 = vmul.f32 %v1679_v46, %v1623_v53  ;;  %v1686_v56 = vadd.f32 1.0, %v2715_v25  ;;  %v2026_v46 = vpop.permute.xlu1 %2025 }
 0x47d   : > { %v2719_v44 = vpop.eup %2718  ;;  %v1680_v38 = vadd.f32 1.0, %v2717_v55  ;;  %v1689_v42 = vmul.f32 %v1681_v31, %v1625_v33  ;;  %v2010_v8 = vadd.f32 %v2002_v26, %v1693_v47 }
 0x47e   : > { %v2004_v3 = vadd.f32 %v1996_v52, %v1687_v19  ;;  %v1682_v61 = vadd.f32 1.0, %v2719_v44  ;;  %v2721_v16 = vpop.eup %2720  ;;  %v1694_v23 = vmul.f32 %v1686_v56, %v1630_v57 }
 0x47f   : > { %v1688_v35 = vmul.f32 %v1680_v38, %v1624_v48  ;;  %v2006_v22 = vadd.f32 %v1998_v24, %v1689_v42  ;;  %v2723_v63 = vpop.eup %2722  ;;  %v1683_v27 = vadd.f32 1.0, %v2721_v16  ;;  %v2034_v10 = vmul.f32 %v2026_v46, %v2010_v8 }
 0x480   : > { %v1690_v32 = vmul.f32 %v1682_v61, %v1626_v62  ;;  %v2028_v21 = vmul.f32 %v2014_v37, %v2004_v3  ;;  %v1684_v9 = vadd.f32 1.0, %v2723_v63  ;;  %v2011_v45 = vadd.f32 %v2003_v58, %v1694_v23 }
 0x481   : > { %v2005_v40 = vadd.f32 %v1997_v41, %v1688_v35  ;;  %v2030_v60 = vmul.f32 %v2018_v39, %v2006_v22  ;;  %v1691_v12 = vmul.f32 %v1683_v27, %v1627_v50 }
 0x482   : > { %v2007_v51 = vadd.f32 %v1999_v43, %v1690_v32  ;;  %v1692_v4 = vmul.f32 %v1684_v9, %v1628_v7 }
 0x483   : > { %v2029_v5 = vmul.f32 %v2014_v37, %v2005_v40  ;;  %v2036_v29 = vadd.f32 %v2030_v60, %v2028_v21  ;;  %v2008_v6 = vadd.f32 %v2000_v54, %v1691_v12  ;;  %v2035_v37 = vmul.f32 %v2026_v46, %v2011_v45  ;;  %v2114_v46 = vpop.permute.xlu0 %2113 }
 0x484   : > { %v2031_v11 = vmul.f32 %v2018_v39, %v2007_v51  ;;  %v2009_v34 = vadd.f32 %v2001_v2, %v1692_v4 }
 0x485   : > { %v2032_v53 = vmul.f32 %v2022_v17, %v2008_v6  ;;  %v2118_v6 = vpop.permute.xlu1 %2117 }
 0x486   : > { %v2045_v1 = vadd.f32 %v2031_v11, %v2029_v5  ;;  %v2033_v52 = vmul.f32 %v2022_v17, %v2009_v34 }
 0x487   : > { %v2037_v41 = vadd.f32 %v2036_v29, %v2032_v53 }
 0x488   : > { %v2046_v13 = vadd.f32 %v2045_v1, %v2033_v52 }
 0x489   : > { %v2038_v25 = vadd.f32 %v2037_v41, %v2034_v10  ;;  %v2142_v34 = vpop.permute.xlu1 %2141 }
 0x48a   : > { %v2047_v36 = vadd.f32 %v2046_v13, %v2035_v37 }
 0x48b   : > { %v2039_v33 = vrot.slane %v2038_v25, 4 }
 0x48c   : > { %v2048_v14 = vrot.slane %v2047_v36, 4 }
 0x48d   : > { %v2040_v31 = vadd.f32 %v2039_v33, %v2038_v25 }
 0x48e   : > { %v2049_v24 = vadd.f32 %v2048_v14, %v2047_v36 }
 0x48f   : > { %v2041_v0 = vrot.slane %v2040_v31, 2 }
 0x490   : > { %v2050_v15 = vrot.slane %v2049_v24, 2 }
 0x491   : > { %v2042_v55 = vadd.f32 %v2041_v0, %v2040_v31 }
 0x492   : > { %v2051_v19 = vadd.f32 %v2050_v15, %v2049_v24  ;;  %v2138_v15 = vpop.permute.xlu0 %2137 }
 0x493   : > { %v2043_v43 = vrot.slane %v2042_v55, 1 }
 0x494   : > { %v2052_v30 = vrot.slane %v2051_v19, 1 }
 0x495   : > { %v2044_v18 = vadd.f32 %v2043_v43, %v2042_v55 }
 0x496   : > { %v2053_v44 = vadd.f32 %v2052_v30, %v2051_v19 }
 0x497   : > { %v2054_v48 = vmul.f32 0.03125, %v2044_v18 }
 0x498   : > { %v2055_v38 = vmul.f32 0.03125, %v2053_v44 }
 0x499   : > { %v2056_v42 = vsub.f32 %v2028_v21, %v2054_v48  ;;  %v2058_v20 = vsub.f32 %v2030_v60, %v2054_v48  ;;  %v2060_v3 = vsub.f32 %v2032_v53, %v2054_v48  ;;  %v2062_v49 = vsub.f32 %v2034_v10, %v2054_v48  ;;  %v2110_v53 = vpop.permute.xlu1 %2109 }
 0x49a   : > { %v2057_v62 = vsub.f32 %v2029_v5, %v2055_v38  ;;  %v2059_v61 = vsub.f32 %v2031_v11, %v2055_v38  ;;  %v2061_v56 = vsub.f32 %v2033_v52, %v2055_v38  ;;  %v2063_v32 = vsub.f32 %v2035_v37, %v2055_v38 }
 0x49b   : > { %v2064_v35 = vmul.f32 %v2056_v42, %v2056_v42  ;;  %v2066_v22 = vmul.f32 %v2058_v20, %v2058_v20  ;;  %v2068_v39 = vmul.f32 %v2060_v3, %v2060_v3  ;;  %v2070_v40 = vmul.f32 %v2062_v49, %v2062_v49 }
 0x49c   : > { %v2065_v59 = vmul.f32 %v2057_v62, %v2057_v62  ;;  %v2067_v16 = vmul.f32 %v2059_v61, %v2059_v61  ;;  %v2069_v47 = vmul.f32 %v2061_v56, %v2061_v56  ;;  %v2071_v51 = vmul.f32 %v2063_v32, %v2063_v32 }
 0x49d   : > { %v2072_v57 = vadd.f32 %v2066_v22, %v2064_v35  ;;  %v2106_v33 = vpop.permute.xlu1 %2105 }
 0x49e   : > { %v2081_v50 = vadd.f32 %v2067_v16, %v2065_v59  ;;  %v2153_v16 = vld [vmem:[#allocation8 + $0x8] sm:$0xff] }
 0x49f   : > { %v2073_v63 = vadd.f32 %v2072_v57, %v2068_v39  ;;  %v2155_v39 = vld [vmem:[#allocation8 + $0x18] sm:$0xff] }
 0x4a0   : > { %v2082_v27 = vadd.f32 %v2081_v50, %v2069_v47  ;;  %v2732_v47 = vld [vmem:[%s3134_s22] sm:$0xff] }
 0x4a1   : > { %v2074_v21 = vadd.f32 %v2073_v63, %v2070_v40  ;;  %v2134_v22 = vpop.permute.xlu1 %2133 }
 0x4a2   : > { %v2083_v60 = vadd.f32 %v2082_v27, %v2071_v51  ;;  %v2733_v27 = vld [vmem:[%s3134_s22 + $0x8] sm:$0xff] }
 0x4a3   : > { %v2075_v23 = vrot.slane %v2074_v21, 4 }
 0x4a4   : > { %v2084_v7 = vrot.slane %v2083_v60, 4 }
 0x4a5   : > { %v2076_v9 = vadd.f32 %v2075_v23, %v2074_v21 }
 0x4a6   : > { %v2085_v5 = vadd.f32 %v2084_v7, %v2083_v60  ;;  %v2734_v7 = vld [vmem:[%s3134_s22 + $0x10] sm:$0xff] }
 0x4a7   : > { %v2077_v26 = vrot.slane %v2076_v9, 2 }
 0x4a8   : > { %v2086_v12 = vrot.slane %v2085_v5, 2 }
 0x4a9   : > { %v2078_v54 = vadd.f32 %v2077_v26, %v2076_v9  ;;  %v2735_v26 = vld [vmem:[%s3134_s22 + $0x18] sm:$0xff] }
 0x4aa   : > { %v2087_v11 = vadd.f32 %v2086_v12, %v2085_v5 }
 0x4ab   : > { %v2079_v58 = vrot.slane %v2078_v54, 1 }
 0x4ac   : > { %v2088_v17 = vrot.slane %v2087_v11, 1 }
 0x4ad   : > { %v2080_v4 = vadd.f32 %v2079_v58, %v2078_v54 }
 0x4ae   : > { %v2089_v2 = vadd.f32 %v2088_v17, %v2087_v11  ;;  %v2736_v17 = vld [vmem:[%s3134_s22 + $0x20] sm:$0xff] }
 0x4af   : > { %v2090_v29 = vmul.f32 0.03125, %v2080_v4 }
 0x4b0   : > { %v2091_v8 = vmul.f32 0.03125, %v2089_v2 }
 0x4b1   : > { %v2092_v1 = vadd.f32 1e-05, %v2090_v29 }
 0x4b2   : > { %v2093_v45 = vadd.f32 1e-05, %v2091_v8  ;;  %v2737_v8 = vld [vmem:[%s3134_s22 + $0x28] sm:$0xff] }
 0x4b3   : > { %2724 = vrsqrt.f32 %v2092_v1 }
 0x4b4   : > { %2726 = vrsqrt.f32 %v2093_v45 }
 0x4c0   : > { %v2725_v52 = vpop.eup %2724 }
 0x4c1   : > { %v2727_v10 = vpop.eup %2726  ;;  %v2102_v41 = vmul.f32 %v2725_v52, %v2062_v49  ;;  %v2100_v37 = vmul.f32 %v2725_v52, %v2060_v3  ;;  %v2098_v31 = vmul.f32 %v2725_v52, %v2058_v20  ;;  %v2096_v43 = vmul.f32 %v2725_v52, %v2056_v42  ;;  %v2152_v42 = vld [vmem:[#allocation8] sm:$0xff] }
 0x4c2   : > { %v2103_v13 = vmul.f32 %v2727_v10, %v2063_v32  ;;  %v2101_v25 = vmul.f32 %v2727_v10, %v2061_v56  ;;  %v2099_v36 = vmul.f32 %v2727_v10, %v2059_v61  ;;  %v2097_v55 = vmul.f32 %v2727_v10, %v2057_v62  ;;  %v2130_v61 = vpop.permute.xlu0 %2129  ;;  %v2154_v32 = vld [vmem:[#allocation8 + $0x10] sm:$0xff] }
 0x4c3   : > { %v2126_v14 = vmul.f32 %v2118_v6, %v2102_v41  ;;  %v2124_v19 = vmul.f32 %v2114_v46, %v2100_v37  ;;  %v2122_v48 = vmul.f32 %v2110_v53, %v2098_v31  ;;  %v2120_v56 = vmul.f32 %v2106_v33, %v2096_v43  ;;  %v2739_v41 = vld [vmem:[%s3134_s22 + $0x38] sm:$0xff] }
 0x4c4   : > { %v2127_v24 = vmul.f32 %v2118_v6, %v2103_v13  ;;  %v2125_v0 = vmul.f32 %v2114_v46, %v2101_v25  ;;  %v2123_v18 = vmul.f32 %v2110_v53, %v2099_v36  ;;  %v2121_v35 = vmul.f32 %v2106_v33, %v2097_v55 }
 0x4c5   : > { %v2150_v44 = vadd.f32 %v2142_v34, %v2126_v14  ;;  %v2148_v3 = vadd.f32 %v2138_v15, %v2124_v19  ;;  %v2146_v20 = vadd.f32 %v2134_v22, %v2122_v48  ;;  %v2144_v62 = vadd.f32 %v2130_v61, %v2120_v56 }
 0x4c6   : > { %v2151_v30 = vadd.f32 %v2142_v34, %v2127_v24  ;;  %v2149_v38 = vadd.f32 %v2138_v15, %v2125_v0  ;;  %v2147_v49 = vadd.f32 %v2134_v22, %v2123_v18  ;;  %v2145_v59 = vadd.f32 %v2130_v61, %v2121_v35  ;;  %v2738_v34 = vld [vmem:[%s3134_s22 + $0x30] sm:$0xff]  ;;  %s2850_s22 = sshll.u32 %s2951_s28, 4  ;;  %s2851_s22 = int_to_ptr.vmem [resolvable:$false] %s2850_s22 }
 0x4c7   : > { %s2852_s12 = scalar_lea.vmem %s2851_s22, 2048  ;;  %p2853_p13 = scmp.lt.s32.totalorder %s4237_s1, %s2851_s22 }
 0x4c8   : > { %2192 = vmatprep.subr.mxu0 %v2151_v30  ;;  %p2854_p0 = scmp.lt.s32.totalorder %s2852_s12, %s2846_s14 }
 0x4c9   : > { %2193 = vmatpush1.msra.mxu0 %v2150_v44 }
 0x4ca   : > { %2194 = vmatprep.subr.mxu0 %v2149_v38  ;;  %p2855_p1 = por %p2854_p0, %p2853_p13 }
 0x4cb   : > { %2195 = vmatpush1.msra.mxu0 %v2148_v3 }
 0x4cc   : > { %2196 = vmatprep.subr.mxu0 %v2147_v49  ;;  %p2856_p3 = pnand %p2855_p1, %p2849_p10 }
 0x4cd   : > { %2197 = vmatpush1.msra.mxu0 %v2146_v20 }
 0x4ce   : > { %2198 = vmatprep.subr.mxu0 %v2145_v59 }
 0x4cf   : > { %2199 = vmatpush1.msra.mxu0 %v2144_v62 }
 0x4d0   : > { %2444 = vmatmul.mubr.msk.f32.vlgmr.msra.gmra.mxu0 %vm965_vm2, %v2152_v42 }
 0x4d1   : > { %2238 = vmatprep.mubr.f32.mxu0 %v2938_v28 }
 0x4d4   : > { %2445 = vmatmul.mubr.msk.f32.gmra.mxu0 %vm965_vm2, %v2153_v16 }
 0x4d5   : > { %2244 = vmatprep.mubr.f32.mxu0 %v2938_v28 }
 0x4d8   : > { %2446 = vmatmul.mubr.msk.f32.gmra.mxu0 %vm965_vm2, %v2154_v32 }
 0x4d9   : > { %2250 = vmatprep.mubr.f32.mxu0 %v2938_v28 }
 0x4dc   : > { %2447 = vmatmul.mubr.msk.f32.gmra.mxu0 %vm965_vm2, %v2155_v39 }
 0x4e5   : > { %v2267_v40 = vpop.permute.xlu1 %2266  ;;  %v2271_v23 = vpop.permute.xlu0 %2270 }
 0x4e9   : > { %v2275_v58 = vpop.permute.xlu1 %2274 }
 0x4ed   : > { %v2279_v10 = vpop.permute.xlu1 %2278 }
 0x590   : > { %v2234_v57 = vpop.f32.mrf.mxu0 }
 0x591   : > { %v2257_v50 = vadd.f32 %v2732_v47, %v2234_v57 }
 0x592   : > { %v2236_v63 = vpop.f32.mrf.mxu0 }
 0x593   : > { %v2258_v51 = vadd.f32 %v2733_v27, %v2236_v63  ;;  %v2281_v21 = vadd.f32 %v2267_v40, %v2257_v50 }
 0x594   : > { %v2240_v60 = vpop.f32.mrf.mxu0 }
 0x595   : > { %v2259_v9 = vadd.f32 %v2734_v7, %v2240_v60  ;;  %v2282_v28 = vadd.f32 %v2267_v40, %v2258_v51  ;;  %2289 = vst [vmem:[%s4222_s30] sm:$0xff] %v2281_v21 }
 0x596   : > { %v2242_v5 = vpop.f32.mrf.mxu0 }
 0x597   : > { %v2260_v12 = vadd.f32 %v2735_v26, %v2242_v5  ;;  %2290 = vst [vmem:[%s4222_s30 + $0x8] sm:$0xff] %v2282_v28  ;;  %v2283_v54 = vadd.f32 %v2271_v23, %v2259_v9 }
 0x598   : > { %v2246_v11 = vpop.f32.mrf.mxu0 }
 0x599   : > { %v2261_v4 = vadd.f32 %v2736_v17, %v2246_v11  ;;  %v2284_v2 = vadd.f32 %v2271_v23, %v2260_v12  ;;  %2291 = vst [vmem:[%s4222_s30 + $0x10] sm:$0xff] %v2283_v54 }
 0x59a   : > { %v2248_v29 = vpop.f32.mrf.mxu0 }
 0x59b   : > { %v2262_v6 = vadd.f32 %v2737_v8, %v2248_v29  ;;  %v2285_v1 = vadd.f32 %v2275_v58, %v2261_v4  ;;  %2292 = vst [vmem:[%s4222_s30 + $0x18] sm:$0xff] %v2284_v2 }
 0x59c   : > { %v2252_v45 = vpop.f32.mrf.mxu0 }
 0x59d   : > { %v2263_v53 = vadd.f32 %v2738_v34, %v2252_v45  ;;  %v2286_v46 = vadd.f32 %v2275_v58, %v2262_v6  ;;  %2293 = vst [vmem:[%s4222_s30 + $0x20] sm:$0xff] %v2285_v1 }
 0x59e   : > { %v2254_v52 = vpop.f32.mrf.mxu0 }
 0x59f   : > { %2294 = vst [vmem:[%s4222_s30 + $0x28] sm:$0xff] %v2286_v46  ;;  %v2264_v37 = vadd.f32 %v2739_v41, %v2254_v52  ;;  %v2287_v13 = vadd.f32 %v2279_v10, %v2263_v53 }
 0x5a1   : > { %v2288_v25 = vadd.f32 %v2279_v10, %v2264_v37  ;;  %2295 = vst [vmem:[%s4222_s30 + $0x30] sm:$0xff] %v2287_v13 }
 0x5a3   : > { %2296 = vst [vmem:[%s4222_s30 + $0x38] sm:$0xff] %v2288_v25 }
 0x5a4   : > { %2859 = shalt.err (!%p2856_p3)
}
 0x5a5   : > { %s2860_s15 = scalar_lea.hbm %s4243_s29, 1024  ;;  %s2864_s30 = scalar_lea.hbm %s4295_s7, 2048 }
 0x5a6   : > { %p2861_p2 = scmp.ne.s32.totalorder %s4243_s29, %s2860_s15  ;;  %p2865_p5 = scmp.lt.s32.totalorder %s4243_s29, %s4295_s7 }
 0x5a7   : > { %p2866_p4 = scmp.lt.s32.totalorder %s2864_s30, %s2860_s15 }
 0x5a8   : > { %p2862_p9 = pnand %p2861_p2, %p4315_p12 }
 0x5a9   : > { %p2867_p6 = por %p2866_p4, %p2865_p5 }
 0x5aa   : > { %p2863_p11 = pneg %p2862_p9 }
 0x5ac   : > { %p2868_p8 = pnand %p2867_p6, %p2863_p11 }
 0x5ae   : > { %2871 = shalt.err (!%p2868_p8)
}
 0x5af   : > { %s2952_s19 = smov 256  }
 0x5b0   : > { %2477 = dma.vmem_to_hbm [thread:$0]  (%p4315_p12), %s4237_s1, 1024, %s4243_s29, %s2298_s23, %s2952_s19, %s2952_s19, %s2939_s10  }
 0x5b1 PF: > { %s2326_s14 = sand.u32 1, %s2906_s24   ;;  %p4316_p7 = scmp.ne.s32.totalorder %s4302_s8, 0 }
 0x5b2   : > { %p4317_p10 = scmp.ge.s32.totalorder %s2918_s27, 2  ;;  %s2327_s28 = scalar_lea.sflag [#allocation4], %s2326_s14 }
 0x5b4   : > { %p2494_p13 = pnand %p4317_p10, %p4316_p7 }
 0x5b6   : > { %p2495_p0 = pneg %p2494_p13 }
 0x5b8   : > { %2901 = dma.done.wait (%p2495_p0), %s2327_s28, 1024  }
 0x5b9   : > { %2903 = vsyncadd (%p2495_p0), %s2327_s28, 4294966272  ;;  %p22_p1 = scmp.ge.s32.totalorder %s3073_s13, 4   ;;  %s4318_s24 = smov %s2910_s25 }
 0x5ba   : > { %s4319_s25 = smov %s2914_s26  ;;  %s4320_s26 = smov %s3083_s17 }
 0x5bb   : > { %s4321_s27 = smov %s3073_s13  ;;  %24 = sbr.rel (!%p22_p1) target bundleno = 9 (0x9), region = 110 }
 0x5c0   :  { %2332 = vsyncpa [#allocation3], 1 }
 0x5c1   :  { %2334 = vsyncpa [#allocation3 + $0x1], 1 }
 0x5c2   :  { %2335 = vsyncpa [#allocation6], 1 }
 0x5c3   :  { %2336 = vsyncpa [#allocation9], 1 }
 0x5c4   :  { %2337 = vsyncpa [#allocation4], 1 }
 0x5c5   :  { %2339 = vsyncpa [#allocation4 + $0x1], 1 }

</bundles_post_ra>
